<compile_context>
chip_gen: v7x
topology: tpu7x:2x2x1
jax: 0.10.0
libtpu: 0.0.40
codegen_flags: <defaults>
</compile_context>

<pallas_src>
import math

import jax
import jax.numpy as jnp
import numpy as np
from jax.experimental import pallas as pl
from jax.experimental.pallas import tpu as pltpu

# ----- MiniBertConfig-equivalent hyper-parameters (small, deterministic) -----
MODEL_SIZE = 32
VOCAB_SIZE = 16
INTERMEDIATE_SIZE = 64
NUM_LAYERS = 2
NUM_HEADS = 4
HEAD_DIM = MODEL_SIZE // NUM_HEADS
LN_EPS = 1e-12
B, S = 2, 8

_PER_LAYER_REFS = 12  # wqkv, bqkv, wo, bo, ln1_g, ln1_b, wi, bi, wo2, bo2, ln2_g, ln2_b


# --------------------------- in-kernel helpers --------------------------------

def _gelu(y):
    # tanh-approximate GELU.
    # TODO(synk): swap to exact-erf GELU if the reference encoder uses erf GELU.
    c = math.sqrt(2.0 / math.pi)
    return 0.5 * y * (1.0 + jnp.tanh(c * (y + 0.044715 * y * y * y)))


def _layernorm(h, g, b):
    mean = jnp.mean(h, axis=-1, keepdims=True)
    var = jnp.mean((h - mean) ** 2, axis=-1, keepdims=True)
    return (h - mean) * jax.lax.rsqrt(var + LN_EPS) * g + b


# --------------------------- fused forward kernel -----------------------------

def _fused_forward_kernel(*refs):
    # refs layout:
    #   inputs : [x, emb_w, emb_b,
    #             (wqkv, bqkv, wo, bo, ln1_g, ln1_b, wi, bi, wo2, bo2, ln2_g, ln2_b)
    #               * NUM_LAYERS,
    #             fc_w, fc_b]
    #   outputs: [logits2d]
    #   scratch: [qkv (M, 3D), ctx (M, D)]   (both VMEM)
    n_in = 3 + _PER_LAYER_REFS * NUM_LAYERS + 2
    x_ref, emb_w_ref, emb_b_ref = refs[0], refs[1], refs[2]
    layer_refs = refs[3:3 + _PER_LAYER_REFS * NUM_LAYERS]
    fc_w_ref = refs[n_in - 2]
    fc_b_ref = refs[n_in - 1]
    out_ref = refs[n_in]
    qkv_ref = refs[n_in + 1]
    ctx_ref = refs[n_in + 2]

    scale = 1.0 / math.sqrt(HEAD_DIM)

    # Embedding Linear: (B*S, V) @ (V, D) + (1, D)
    h = jnp.dot(x_ref[...], emb_w_ref[...],
                preferred_element_type=jnp.float32) + emb_b_ref[...]

    for l in range(NUM_LAYERS):
        (wqkv, bqkv, wo, bo, g1, b1,
         wi, bi, wo2, bo2, g2, b2) = layer_refs[l * _PER_LAYER_REFS:
                                                (l + 1) * _PER_LAYER_REFS]

        # Fused QKV projection: one (D, 3D) matmul instead of three kernel calls.
        qkv_ref[...] = jnp.dot(h, wqkv[...],
                               preferred_element_type=jnp.float32) + bqkv[...]

        # Attention, unrolled over the B*H = 8 (batch, head) pairs.  Everything
        # stays in VMEM / vregs; head blocks are static slices of the QKV scratch.
        for b_idx in range(B):
            rows = slice(b_idx * S, (b_idx + 1) * S)
            for h_idx in range(NUM_HEADS):
                q_cols = slice(h_idx * HEAD_DIM, (h_idx + 1) * HEAD_DIM)
                k_cols = slice(MODEL_SIZE + h_idx * HEAD_DIM,
                               MODEL_SIZE + (h_idx + 1) * HEAD_DIM)
                v_cols = slice(2 * MODEL_SIZE + h_idx * HEAD_DIM,
                               2 * MODEL_SIZE + (h_idx + 1) * HEAD_DIM)
                qb = qkv_ref[rows, q_cols]
                kb = qkv_ref[rows, k_cols]
                vb = qkv_ref[rows, v_cols]
                s = jax.lax.dot_general(
                    qb, kb, (((1,), (1,)), ((), ())),
                    preferred_element_type=jnp.float32) * scale
                s = s - jnp.max(s, axis=-1, keepdims=True)
                p = jnp.exp(s)
                p = p / jnp.sum(p, axis=-1, keepdims=True)
                ctx_ref[rows, q_cols] = jnp.dot(
                    p, vb, preferred_element_type=jnp.float32)

        # Output projection + residual + LayerNorm.
        attn = jnp.dot(ctx_ref[...], wo[...],
                       preferred_element_type=jnp.float32) + bo[...]
        h = _layernorm(attn + h, g1[...], b1[...])

        # FFN (GELU) + residual + LayerNorm.
        inter = _gelu(jnp.dot(h, wi[...],
                              preferred_element_type=jnp.float32) + bi[...])
        ffn = jnp.dot(inter, wo2[...],
                      preferred_element_type=jnp.float32) + bo2[...]
        h = _layernorm(ffn + h, g2[...], b2[...])

    # fc head: (B*S, D) @ (D, V) + (1, V)
    out_ref[...] = jnp.dot(h, fc_w_ref[...],
                           preferred_element_type=jnp.float32) + fc_b_ref[...]


# ------------------------------ wrapper ---------------------------------------

def _flatten_params(params):
    flat = [params["emb"][0], params["emb"][1]]
    for layer in params["layers"]:
        flat += [layer["wqkv"], layer["bqkv"], layer["wo"], layer["bo"],
                 layer["ln1_g"], layer["ln1_b"], layer["wi"], layer["bi"],
                 layer["wo2"], layer["bo2"], layer["ln2_g"], layer["ln2_b"]]
    flat += [params["fc"][0], params["fc"][1]]
    return flat


def mini_bert_ae_forward(params, x):
    Bb, Ss, Vv = x.shape
    M = Bb * Ss
    inputs = [x.reshape(M, Vv)] + _flatten_params(params)
    vmem = pl.BlockSpec(memory_space=pltpu.MemorySpace.VMEM)
    logits2d = pl.pallas_call(
        _fused_forward_kernel,
        out_shape=jax.ShapeDtypeStruct((M, VOCAB_SIZE), jnp.float32),
        in_specs=[vmem] * len(inputs),
        out_specs=vmem,
        scratch_shapes=[pltpu.VMEM((M, 3 * MODEL_SIZE), jnp.float32),  # qkv
                        pltpu.VMEM((M, MODEL_SIZE), jnp.float32)],     # ctx
    )(*inputs)
    # logits.permute(0, 2, 1): (B, S, V) -> (B, V, S); one tiny XLA transpose.
    return jnp.transpose(logits2d.reshape(Bb, Ss, Vv), (0, 2, 1))


# ------------------------- parameters & reference -----------------------------

def init_params(key):
    keys = iter(jax.random.split(key, 64))

    def lin(k_in, k_out):
        kw, kb = next(keys), next(keys)
        w = 0.02 * jax.random.normal(kw, (k_in, k_out), jnp.float32)
        b = 0.02 * jax.random.normal(kb, (1, k_out), jnp.float32)
        return w, b

    params = {"emb": lin(VOCAB_SIZE, MODEL_SIZE), "layers": []}
    for _ in range(NUM_LAYERS):
        wq, bq = lin(MODEL_SIZE, MODEL_SIZE)
        wk, bk = lin(MODEL_SIZE, MODEL_SIZE)
        wv, bv = lin(MODEL_SIZE, MODEL_SIZE)
        wo, bo = lin(MODEL_SIZE, MODEL_SIZE)
        wi, bi = lin(MODEL_SIZE, INTERMEDIATE_SIZE)
        wo2, bo2 = lin(INTERMEDIATE_SIZE, MODEL_SIZE)
        params["layers"].append({
            "wqkv": jnp.concatenate([wq, wk, wv], axis=1),   # (D, 3D)
            "bqkv": jnp.concatenate([bq, bk, bv], axis=1),   # (1, 3D)
            "wo": wo, "bo": bo,
            "ln1_g": jnp.ones((1, MODEL_SIZE), jnp.float32),
            "ln1_b": jnp.zeros((1, MODEL_SIZE), jnp.float32),
            "wi": wi, "bi": bi,
            "wo2": wo2, "bo2": bo2,
            "ln2_g": jnp.ones((1, MODEL_SIZE), jnp.float32),
            "ln2_b": jnp.zeros((1, MODEL_SIZE), jnp.float32),
        })
    params["fc"] = lin(MODEL_SIZE, VOCAB_SIZE)
    return params


def reference_forward(params, x):
    def gelu(y):
        c = math.sqrt(2.0 / math.pi)
        return 0.5 * y * (1.0 + jnp.tanh(c * (y + 0.044715 * y ** 3)))

    def ln(t, g, b):
        m = t.mean(-1, keepdims=True)
        v = ((t - m) ** 2).mean(-1, keepdims=True)
        return (t - m) * jax.lax.rsqrt(v + LN_EPS) * g + b

    Bb, Ss, _ = x.shape
    emb_w, emb_b = params["emb"]
    h = x @ emb_w + emb_b
    for layer in params["layers"]:
        qkv = h @ layer["wqkv"] + layer["bqkv"]
        q, k, v = jnp.split(qkv, 3, axis=-1)

        def heads(t):
            return t.reshape(Bb, Ss, NUM_HEADS, HEAD_DIM).transpose(0, 2, 1, 3)

        q, k, v = heads(q), heads(k), heads(v)
        s = jnp.einsum("bhqd,bhkd->bhqk", q, k) / math.sqrt(HEAD_DIM)
        p = jax.nn.softmax(s, axis=-1)
        ctx = (jnp.einsum("bhqk,bhkd->bhqd", p, v)
               .transpose(0, 2, 1, 3).reshape(Bb, Ss, MODEL_SIZE))
        h = ln(ctx @ layer["wo"] + layer["bo"] + h, layer["ln1_g"], layer["ln1_b"])
        ffn = gelu(h @ layer["wi"] + layer["bi"]) @ layer["wo2"] + layer["bo2"]
        h = ln(ffn + h, layer["ln2_g"], layer["ln2_b"])
    fc_w, fc_b = params["fc"]
    logits = h @ fc_w + fc_b
    return jnp.transpose(logits, (0, 2, 1))


if __name__ == "__main__":
    key = jax.random.PRNGKey(0)
    k_params, k_x = jax.random.split(key)
    params = init_params(k_params)
    x = jax.random.normal(k_x, (B, S, VOCAB_SIZE), jnp.float32)

    out = jax.jit(mini_bert_ae_forward)(params, x)
    out = jax.block_until_ready(out)

    ref = reference_forward(params, x)
    assert out.shape == (B, VOCAB_SIZE, S), out.shape
    np.testing.assert_allclose(np.asarray(out), np.asarray(ref), atol=1e-4, rtol=1e-4)

    print("KERNEL_OK")
</pallas_src>

<mosaic_0001>
module attributes {stable_mosaic.version = 11 : i64} {
  func.func @_fused_forward_kernel(%arg0: memref<16x16xf32, #tpu.memory_space<vmem>>, %arg1: memref<16x32xf32, #tpu.memory_space<vmem>>, %arg2: memref<1x32xf32, #tpu.memory_space<vmem>>, %arg3: memref<32x96xf32, #tpu.memory_space<vmem>>, %arg4: memref<1x96xf32, #tpu.memory_space<vmem>>, %arg5: memref<32x32xf32, #tpu.memory_space<vmem>>, %arg6: memref<1x32xf32, #tpu.memory_space<vmem>>, %arg7: memref<1x32xf32, #tpu.memory_space<vmem>>, %arg8: memref<1x32xf32, #tpu.memory_space<vmem>>, %arg9: memref<32x64xf32, #tpu.memory_space<vmem>>, %arg10: memref<1x64xf32, #tpu.memory_space<vmem>>, %arg11: memref<64x32xf32, #tpu.memory_space<vmem>>, %arg12: memref<1x32xf32, #tpu.memory_space<vmem>>, %arg13: memref<1x32xf32, #tpu.memory_space<vmem>>, %arg14: memref<1x32xf32, #tpu.memory_space<vmem>>, %arg15: memref<32x96xf32, #tpu.memory_space<vmem>>, %arg16: memref<1x96xf32, #tpu.memory_space<vmem>>, %arg17: memref<32x32xf32, #tpu.memory_space<vmem>>, %arg18: memref<1x32xf32, #tpu.memory_space<vmem>>, %arg19: memref<1x32xf32, #tpu.memory_space<vmem>>, %arg20: memref<1x32xf32, #tpu.memory_space<vmem>>, %arg21: memref<32x64xf32, #tpu.memory_space<vmem>>, %arg22: memref<1x64xf32, #tpu.memory_space<vmem>>, %arg23: memref<64x32xf32, #tpu.memory_space<vmem>>, %arg24: memref<1x32xf32, #tpu.memory_space<vmem>>, %arg25: memref<1x32xf32, #tpu.memory_space<vmem>>, %arg26: memref<1x32xf32, #tpu.memory_space<vmem>>, %arg27: memref<32x16xf32, #tpu.memory_space<vmem>>, %arg28: memref<1x16xf32, #tpu.memory_space<vmem>>, %arg29: memref<16x16xf32, #tpu.memory_space<vmem>>, %arg30: memref<16x96xf32, #tpu.memory_space<vmem>>, %arg31: memref<16x32xf32, #tpu.memory_space<vmem>>) attributes {dimension_semantics = [], scalar_prefetch = 0 : i64, scratch_operands = 2 : i64, tpu.core_type = #tpu.core_type<tc>} {
    %c0 = arith.constant 0 : index
    %c0_0 = arith.constant 0 : index
    %0 = vector.load %arg0[%c0, %c0_0] : memref<16x16xf32, #tpu.memory_space<vmem>>, vector<16x16xf32>
    %c0_1 = arith.constant 0 : index
    %c0_2 = arith.constant 0 : index
    %1 = vector.load %arg1[%c0_1, %c0_2] : memref<16x32xf32, #tpu.memory_space<vmem>>, vector<16x32xf32>
    %cst = arith.constant dense<0.000000e+00> : vector<16x32xf32>
    %2 = tpu.matmul %0, %1, %cst {dimension_numbers = #tpu.dot_dimension_numbers<[1], [0], [0], [1], [0, 0, 1, 1], [], []>} : vector<16x16xf32>, vector<16x32xf32>, vector<16x32xf32> -> vector<16x32xf32>
    %c0_3 = arith.constant 0 : index
    %c0_4 = arith.constant 0 : index
    %3 = vector.load %arg2[%c0_3, %c0_4] : memref<1x32xf32, #tpu.memory_space<vmem>>, vector<1x32xf32>
    %4 = vector.broadcast %3 : vector<1x32xf32> to vector<16x32xf32>
    %5 = arith.addf %2, %4 : vector<16x32xf32>
    %c0_5 = arith.constant 0 : index
    %c0_6 = arith.constant 0 : index
    %6 = vector.load %arg3[%c0_5, %c0_6] : memref<32x96xf32, #tpu.memory_space<vmem>>, vector<32x96xf32>
    %cst_7 = arith.constant dense<0.000000e+00> : vector<16x96xf32>
    %7 = tpu.matmul %5, %6, %cst_7 {dimension_numbers = #tpu.dot_dimension_numbers<[1], [0], [0], [1], [0, 0, 1, 1], [], []>} : vector<16x32xf32>, vector<32x96xf32>, vector<16x96xf32> -> vector<16x96xf32>
    %c0_8 = arith.constant 0 : index
    %c0_9 = arith.constant 0 : index
    %8 = vector.load %arg4[%c0_8, %c0_9] : memref<1x96xf32, #tpu.memory_space<vmem>>, vector<1x96xf32>
    %9 = vector.broadcast %8 : vector<1x96xf32> to vector<16x96xf32>
    %10 = arith.addf %7, %9 : vector<16x96xf32>
    %c0_10 = arith.constant 0 : index
    %c0_11 = arith.constant 0 : index
    %11 = vector.load %arg30[%c0_10, %c0_11] : memref<16x96xf32, #tpu.memory_space<vmem>>, vector<16x96xf32>
    tpu.vector_store %arg30[%c0_10, %c0_11], %10 {strides = array<i32>} : memref<16x96xf32, #tpu.memory_space<vmem>>, vector<16x96xf32>,
    %c0_12 = arith.constant 0 : index
    %c0_13 = arith.constant 0 : index
    %12 = vector.load %arg30[%c0_12, %c0_13] : memref<16x96xf32, #tpu.memory_space<vmem>>, vector<8x8xf32>
    %c0_14 = arith.constant 0 : index
    %c32 = arith.constant 32 : index
    %13 = vector.load %arg30[%c0_14, %c32] : memref<16x96xf32, #tpu.memory_space<vmem>>, vector<8x8xf32>
    %c0_15 = arith.constant 0 : index
    %c64 = arith.constant 64 : index
    %14 = vector.load %arg30[%c0_15, %c64] : memref<16x96xf32, #tpu.memory_space<vmem>>, vector<8x8xf32>
    %cst_16 = arith.constant dense<0.000000e+00> : vector<8x8xf32>
    %15 = tpu.matmul %12, %13, %cst_16 {dimension_numbers = #tpu.dot_dimension_numbers<[1], [1], [0], [0], [0, 0, 1, 0], [], []>} : vector<8x8xf32>, vector<8x8xf32>, vector<8x8xf32> -> vector<8x8xf32>
    %cst_17 = arith.constant 0.353553385 : f32
    %16 = vector.broadcast %cst_17 : f32 to vector<8x8xf32>
    %17 = arith.mulf %15, %16 : vector<8x8xf32>
    %cst_18 = arith.constant dense<0xFF800000> : vector<8xf32>
    %18 = vector.multi_reduction <maximumf>, %17, %cst_18 [1] : vector<8x8xf32> to vector<8xf32>
    %19 = vector.shape_cast %18 : vector<8xf32> to vector<8x1xf32>
    %20 = vector.broadcast %19 : vector<8x1xf32> to vector<8x8xf32>
    %21 = arith.subf %17, %20 : vector<8x8xf32>
    %22 = math.exp %21 : vector<8x8xf32>
    %cst_19 = arith.constant dense<0.000000e+00> : vector<8xf32>
    %23 = vector.multi_reduction <add>, %22, %cst_19 [1] : vector<8x8xf32> to vector<8xf32>
    %24 = vector.shape_cast %23 : vector<8xf32> to vector<8x1xf32>
    %25 = vector.broadcast %24 : vector<8x1xf32> to vector<8x8xf32>
    %26 = arith.divf %22, %25 : vector<8x8xf32>
    %cst_20 = arith.constant dense<0.000000e+00> : vector<8x8xf32>
    %27 = tpu.matmul %26, %14, %cst_20 {dimension_numbers = #tpu.dot_dimension_numbers<[1], [0], [0], [1], [0, 0, 1, 1], [], []>} : vector<8x8xf32>, vector<8x8xf32>, vector<8x8xf32> -> vector<8x8xf32>
    %c0_21 = arith.constant 0 : index
    %c0_22 = arith.constant 0 : index
    %28 = vector.load %arg31[%c0_21, %c0_22] : memref<16x32xf32, #tpu.memory_space<vmem>>, vector<8x8xf32>
    tpu.vector_store %arg31[%c0_21, %c0_22], %27 {strides = array<i32>} : memref<16x32xf32, #tpu.memory_space<vmem>>, vector<8x8xf32>,
    %c0_23 = arith.constant 0 : index
    %c8 = arith.constant 8 : index
    %29 = vector.load %arg30[%c0_23, %c8] : memref<16x96xf32, #tpu.memory_space<vmem>>, vector<8x8xf32>
    %c0_24 = arith.constant 0 : index
    %c40 = arith.constant 40 : index
    %30 = vector.load %arg30[%c0_24, %c40] : memref<16x96xf32, #tpu.memory_space<vmem>>, vector<8x8xf32>
    %c0_25 = arith.constant 0 : index
    %c72 = arith.constant 72 : index
    %31 = vector.load %arg30[%c0_25, %c72] : memref<16x96xf32, #tpu.memory_space<vmem>>, vector<8x8xf32>
    %cst_26 = arith.constant dense<0.000000e+00> : vector<8x8xf32>
    %32 = tpu.matmul %29, %30, %cst_26 {dimension_numbers = #tpu.dot_dimension_numbers<[1], [1], [0], [0], [0, 0, 1, 0], [], []>} : vector<8x8xf32>, vector<8x8xf32>, vector<8x8xf32> -> vector<8x8xf32>
    %cst_27 = arith.constant 0.353553385 : f32
    %33 = vector.broadcast %cst_27 : f32 to vector<8x8xf32>
    %34 = arith.mulf %32, %33 : vector<8x8xf32>
    %cst_28 = arith.constant dense<0xFF800000> : vector<8xf32>
    %35 = vector.multi_reduction <maximumf>, %34, %cst_28 [1] : vector<8x8xf32> to vector<8xf32>
    %36 = vector.shape_cast %35 : vector<8xf32> to vector<8x1xf32>
    %37 = vector.broadcast %36 : vector<8x1xf32> to vector<8x8xf32>
    %38 = arith.subf %34, %37 : vector<8x8xf32>
    %39 = math.exp %38 : vector<8x8xf32>
    %cst_29 = arith.constant dense<0.000000e+00> : vector<8xf32>
    %40 = vector.multi_reduction <add>, %39, %cst_29 [1] : vector<8x8xf32> to vector<8xf32>
    %41 = vector.shape_cast %40 : vector<8xf32> to vector<8x1xf32>
    %42 = vector.broadcast %41 : vector<8x1xf32> to vector<8x8xf32>
    %43 = arith.divf %39, %42 : vector<8x8xf32>
    %cst_30 = arith.constant dense<0.000000e+00> : vector<8x8xf32>
    %44 = tpu.matmul %43, %31, %cst_30 {dimension_numbers = #tpu.dot_dimension_numbers<[1], [0], [0], [1], [0, 0, 1, 1], [], []>} : vector<8x8xf32>, vector<8x8xf32>, vector<8x8xf32> -> vector<8x8xf32>
    %c0_31 = arith.constant 0 : index
    %c8_32 = arith.constant 8 : index
    %45 = vector.load %arg31[%c0_31, %c8_32] : memref<16x32xf32, #tpu.memory_space<vmem>>, vector<8x8xf32>
    tpu.vector_store %arg31[%c0_31, %c8_32], %44 {strides = array<i32>} : memref<16x32xf32, #tpu.memory_space<vmem>>, vector<8x8xf32>,
    %c0_33 = arith.constant 0 : index
    %c16 = arith.constant 16 : index
    %46 = vector.load %arg30[%c0_33, %c16] : memref<16x96xf32, #tpu.memory_space<vmem>>, vector<8x8xf32>
    %c0_34 = arith.constant 0 : index
    %c48 = arith.constant 48 : index
    %47 = vector.load %arg30[%c0_34, %c48] : memref<16x96xf32, #tpu.memory_space<vmem>>, vector<8x8xf32>
    %c0_35 = arith.constant 0 : index
    %c80 = arith.constant 80 : index
    %48 = vector.load %arg30[%c0_35, %c80] : memref<16x96xf32, #tpu.memory_space<vmem>>, vector<8x8xf32>
    %cst_36 = arith.constant dense<0.000000e+00> : vector<8x8xf32>
    %49 = tpu.matmul %46, %47, %cst_36 {dimension_numbers = #tpu.dot_dimension_numbers<[1], [1], [0], [0], [0, 0, 1, 0], [], []>} : vector<8x8xf32>, vector<8x8xf32>, vector<8x8xf32> -> vector<8x8xf32>
    %cst_37 = arith.constant 0.353553385 : f32
    %50 = vector.broadcast %cst_37 : f32 to vector<8x8xf32>
    %51 = arith.mulf %49, %50 : vector<8x8xf32>
    %cst_38 = arith.constant dense<0xFF800000> : vector<8xf32>
    %52 = vector.multi_reduction <maximumf>, %51, %cst_38 [1] : vector<8x8xf32> to vector<8xf32>
    %53 = vector.shape_cast %52 : vector<8xf32> to vector<8x1xf32>
    %54 = vector.broadcast %53 : vector<8x1xf32> to vector<8x8xf32>
    %55 = arith.subf %51, %54 : vector<8x8xf32>
    %56 = math.exp %55 : vector<8x8xf32>
    %cst_39 = arith.constant dense<0.000000e+00> : vector<8xf32>
    %57 = vector.multi_reduction <add>, %56, %cst_39 [1] : vector<8x8xf32> to vector<8xf32>
    %58 = vector.shape_cast %57 : vector<8xf32> to vector<8x1xf32>
    %59 = vector.broadcast %58 : vector<8x1xf32> to vector<8x8xf32>
    %60 = arith.divf %56, %59 : vector<8x8xf32>
    %cst_40 = arith.constant dense<0.000000e+00> : vector<8x8xf32>
    %61 = tpu.matmul %60, %48, %cst_40 {dimension_numbers = #tpu.dot_dimension_numbers<[1], [0], [0], [1], [0, 0, 1, 1], [], []>} : vector<8x8xf32>, vector<8x8xf32>, vector<8x8xf32> -> vector<8x8xf32>
    %c0_41 = arith.constant 0 : index
    %c16_42 = arith.constant 16 : index
    %62 = vector.load %arg31[%c0_41, %c16_42] : memref<16x32xf32, #tpu.memory_space<vmem>>, vector<8x8xf32>
    tpu.vector_store %arg31[%c0_41, %c16_42], %61 {strides = array<i32>} : memref<16x32xf32, #tpu.memory_space<vmem>>, vector<8x8xf32>,
    %c0_43 = arith.constant 0 : index
    %c24 = arith.constant 24 : index
    %63 = vector.load %arg30[%c0_43, %c24] : memref<16x96xf32, #tpu.memory_space<vmem>>, vector<8x8xf32>
    %c0_44 = arith.constant 0 : index
    %c56 = arith.constant 56 : index
    %64 = vector.load %arg30[%c0_44, %c56] : memref<16x96xf32, #tpu.memory_space<vmem>>, vector<8x8xf32>
    %c0_45 = arith.constant 0 : index
    %c88 = arith.constant 88 : index
    %65 = vector.load %arg30[%c0_45, %c88] : memref<16x96xf32, #tpu.memory_space<vmem>>, vector<8x8xf32>
    %cst_46 = arith.constant dense<0.000000e+00> : vector<8x8xf32>
    %66 = tpu.matmul %63, %64, %cst_46 {dimension_numbers = #tpu.dot_dimension_numbers<[1], [1], [0], [0], [0, 0, 1, 0], [], []>} : vector<8x8xf32>, vector<8x8xf32>, vector<8x8xf32> -> vector<8x8xf32>
    %cst_47 = arith.constant 0.353553385 : f32
    %67 = vector.broadcast %cst_47 : f32 to vector<8x8xf32>
    %68 = arith.mulf %66, %67 : vector<8x8xf32>
    %cst_48 = arith.constant dense<0xFF800000> : vector<8xf32>
    %69 = vector.multi_reduction <maximumf>, %68, %cst_48 [1] : vector<8x8xf32> to vector<8xf32>
    %70 = vector.shape_cast %69 : vector<8xf32> to vector<8x1xf32>
    %71 = vector.broadcast %70 : vector<8x1xf32> to vector<8x8xf32>
    %72 = arith.subf %68, %71 : vector<8x8xf32>
    %73 = math.exp %72 : vector<8x8xf32>
    %cst_49 = arith.constant dense<0.000000e+00> : vector<8xf32>
    %74 = vector.multi_reduction <add>, %73, %cst_49 [1] : vector<8x8xf32> to vector<8xf32>
    %75 = vector.shape_cast %74 : vector<8xf32> to vector<8x1xf32>
    %76 = vector.broadcast %75 : vector<8x1xf32> to vector<8x8xf32>
    %77 = arith.divf %73, %76 : vector<8x8xf32>
    %cst_50 = arith.constant dense<0.000000e+00> : vector<8x8xf32>
    %78 = tpu.matmul %77, %65, %cst_50 {dimension_numbers = #tpu.dot_dimension_numbers<[1], [0], [0], [1], [0, 0, 1, 1], [], []>} : vector<8x8xf32>, vector<8x8xf32>, vector<8x8xf32> -> vector<8x8xf32>
    %c0_51 = arith.constant 0 : index
    %c24_52 = arith.constant 24 : index
    %79 = vector.load %arg31[%c0_51, %c24_52] : memref<16x32xf32, #tpu.memory_space<vmem>>, vector<8x8xf32>
    tpu.vector_store %arg31[%c0_51, %c24_52], %78 {strides = array<i32>} : memref<16x32xf32, #tpu.memory_space<vmem>>, vector<8x8xf32>,
    %c8_53 = arith.constant 8 : index
    %c0_54 = arith.constant 0 : index
    %80 = vector.load %arg30[%c8_53, %c0_54] : memref<16x96xf32, #tpu.memory_space<vmem>>, vector<8x8xf32>
    %c8_55 = arith.constant 8 : index
    %c32_56 = arith.constant 32 : index
    %81 = vector.load %arg30[%c8_55, %c32_56] : memref<16x96xf32, #tpu.memory_space<vmem>>, vector<8x8xf32>
    %c8_57 = arith.constant 8 : index
    %c64_58 = arith.constant 64 : index
    %82 = vector.load %arg30[%c8_57, %c64_58] : memref<16x96xf32, #tpu.memory_space<vmem>>, vector<8x8xf32>
    %cst_59 = arith.constant dense<0.000000e+00> : vector<8x8xf32>
    %83 = tpu.matmul %80, %81, %cst_59 {dimension_numbers = #tpu.dot_dimension_numbers<[1], [1], [0], [0], [0, 0, 1, 0], [], []>} : vector<8x8xf32>, vector<8x8xf32>, vector<8x8xf32> -> vector<8x8xf32>
    %cst_60 = arith.constant 0.353553385 : f32
    %84 = vector.broadcast %cst_60 : f32 to vector<8x8xf32>
    %85 = arith.mulf %83, %84 : vector<8x8xf32>
    %cst_61 = arith.constant dense<0xFF800000> : vector<8xf32>
    %86 = vector.multi_reduction <maximumf>, %85, %cst_61 [1] : vector<8x8xf32> to vector<8xf32>
    %87 = vector.shape_cast %86 : vector<8xf32> to vector<8x1xf32>
    %88 = vector.broadcast %87 : vector<8x1xf32> to vector<8x8xf32>
    %89 = arith.subf %85, %88 : vector<8x8xf32>
    %90 = math.exp %89 : vector<8x8xf32>
    %cst_62 = arith.constant dense<0.000000e+00> : vector<8xf32>
    %91 = vector.multi_reduction <add>, %90, %cst_62 [1] : vector<8x8xf32> to vector<8xf32>
    %92 = vector.shape_cast %91 : vector<8xf32> to vector<8x1xf32>
    %93 = vector.broadcast %92 : vector<8x1xf32> to vector<8x8xf32>
    %94 = arith.divf %90, %93 : vector<8x8xf32>
    %cst_63 = arith.constant dense<0.000000e+00> : vector<8x8xf32>
    %95 = tpu.matmul %94, %82, %cst_63 {dimension_numbers = #tpu.dot_dimension_numbers<[1], [0], [0], [1], [0, 0, 1, 1], [], []>} : vector<8x8xf32>, vector<8x8xf32>, vector<8x8xf32> -> vector<8x8xf32>
    %c8_64 = arith.constant 8 : index
    %c0_65 = arith.constant 0 : index
    %96 = vector.load %arg31[%c8_64, %c0_65] : memref<16x32xf32, #tpu.memory_space<vmem>>, vector<8x8xf32>
    tpu.vector_store %arg31[%c8_64, %c0_65], %95 {strides = array<i32>} : memref<16x32xf32, #tpu.memory_space<vmem>>, vector<8x8xf32>,
    %c8_66 = arith.constant 8 : index
    %c8_67 = arith.constant 8 : index
    %97 = vector.load %arg30[%c8_66, %c8_67] : memref<16x96xf32, #tpu.memory_space<vmem>>, vector<8x8xf32>
    %c8_68 = arith.constant 8 : index
    %c40_69 = arith.constant 40 : index
    %98 = vector.load %arg30[%c8_68, %c40_69] : memref<16x96xf32, #tpu.memory_space<vmem>>, vector<8x8xf32>
    %c8_70 = arith.constant 8 : index
    %c72_71 = arith.constant 72 : index
    %99 = vector.load %arg30[%c8_70, %c72_71] : memref<16x96xf32, #tpu.memory_space<vmem>>, vector<8x8xf32>
    %cst_72 = arith.constant dense<0.000000e+00> : vector<8x8xf32>
    %100 = tpu.matmul %97, %98, %cst_72 {dimension_numbers = #tpu.dot_dimension_numbers<[1], [1], [0], [0], [0, 0, 1, 0], [], []>} : vector<8x8xf32>, vector<8x8xf32>, vector<8x8xf32> -> vector<8x8xf32>
    %cst_73 = arith.constant 0.353553385 : f32
    %101 = vector.broadcast %cst_73 : f32 to vector<8x8xf32>
    %102 = arith.mulf %100, %101 : vector<8x8xf32>
    %cst_74 = arith.constant dense<0xFF800000> : vector<8xf32>
    %103 = vector.multi_reduction <maximumf>, %102, %cst_74 [1] : vector<8x8xf32> to vector<8xf32>
    %104 = vector.shape_cast %103 : vector<8xf32> to vector<8x1xf32>
    %105 = vector.broadcast %104 : vector<8x1xf32> to vector<8x8xf32>
    %106 = arith.subf %102, %105 : vector<8x8xf32>
    %107 = math.exp %106 : vector<8x8xf32>
    %cst_75 = arith.constant dense<0.000000e+00> : vector<8xf32>
    %108 = vector.multi_reduction <add>, %107, %cst_75 [1] : vector<8x8xf32> to vector<8xf32>
    %109 = vector.shape_cast %108 : vector<8xf32> to vector<8x1xf32>
    %110 = vector.broadcast %109 : vector<8x1xf32> to vector<8x8xf32>
    %111 = arith.divf %107, %110 : vector<8x8xf32>
    %cst_76 = arith.constant dense<0.000000e+00> : vector<8x8xf32>
    %112 = tpu.matmul %111, %99, %cst_76 {dimension_numbers = #tpu.dot_dimension_numbers<[1], [0], [0], [1], [0, 0, 1, 1], [], []>} : vector<8x8xf32>, vector<8x8xf32>, vector<8x8xf32> -> vector<8x8xf32>
    %c8_77 = arith.constant 8 : index
    %c8_78 = arith.constant 8 : index
    %113 = vector.load %arg31[%c8_77, %c8_78] : memref<16x32xf32, #tpu.memory_space<vmem>>, vector<8x8xf32>
    tpu.vector_store %arg31[%c8_77, %c8_78], %112 {strides = array<i32>} : memref<16x32xf32, #tpu.memory_space<vmem>>, vector<8x8xf32>,
    %c8_79 = arith.constant 8 : index
    %c16_80 = arith.constant 16 : index
    %114 = vector.load %arg30[%c8_79, %c16_80] : memref<16x96xf32, #tpu.memory_space<vmem>>, vector<8x8xf32>
    %c8_81 = arith.constant 8 : index
    %c48_82 = arith.constant 48 : index
    %115 = vector.load %arg30[%c8_81, %c48_82] : memref<16x96xf32, #tpu.memory_space<vmem>>, vector<8x8xf32>
    %c8_83 = arith.constant 8 : index
    %c80_84 = arith.constant 80 : index
    %116 = vector.load %arg30[%c8_83, %c80_84] : memref<16x96xf32, #tpu.memory_space<vmem>>, vector<8x8xf32>
    %cst_85 = arith.constant dense<0.000000e+00> : vector<8x8xf32>
    %117 = tpu.matmul %114, %115, %cst_85 {dimension_numbers = #tpu.dot_dimension_numbers<[1], [1], [0], [0], [0, 0, 1, 0], [], []>} : vector<8x8xf32>, vector<8x8xf32>, vector<8x8xf32> -> vector<8x8xf32>
    %cst_86 = arith.constant 0.353553385 : f32
    %118 = vector.broadcast %cst_86 : f32 to vector<8x8xf32>
    %119 = arith.mulf %117, %118 : vector<8x8xf32>
    %cst_87 = arith.constant dense<0xFF800000> : vector<8xf32>
    %120 = vector.multi_reduction <maximumf>, %119, %cst_87 [1] : vector<8x8xf32> to vector<8xf32>
    %121 = vector.shape_cast %120 : vector<8xf32> to vector<8x1xf32>
    %122 = vector.broadcast %121 : vector<8x1xf32> to vector<8x8xf32>
    %123 = arith.subf %119, %122 : vector<8x8xf32>
    %124 = math.exp %123 : vector<8x8xf32>
    %cst_88 = arith.constant dense<0.000000e+00> : vector<8xf32>
    %125 = vector.multi_reduction <add>, %124, %cst_88 [1] : vector<8x8xf32> to vector<8xf32>
    %126 = vector.shape_cast %125 : vector<8xf32> to vector<8x1xf32>
    %127 = vector.broadcast %126 : vector<8x1xf32> to vector<8x8xf32>
    %128 = arith.divf %124, %127 : vector<8x8xf32>
    %cst_89 = arith.constant dense<0.000000e+00> : vector<8x8xf32>
    %129 = tpu.matmul %128, %116, %cst_89 {dimension_numbers = #tpu.dot_dimension_numbers<[1], [0], [0], [1], [0, 0, 1, 1], [], []>} : vector<8x8xf32>, vector<8x8xf32>, vector<8x8xf32> -> vector<8x8xf32>
    %c8_90 = arith.constant 8 : index
    %c16_91 = arith.constant 16 : index
    %130 = vector.load %arg31[%c8_90, %c16_91] : memref<16x32xf32, #tpu.memory_space<vmem>>, vector<8x8xf32>
    tpu.vector_store %arg31[%c8_90, %c16_91], %129 {strides = array<i32>} : memref<16x32xf32, #tpu.memory_space<vmem>>, vector<8x8xf32>,
    %c8_92 = arith.constant 8 : index
    %c24_93 = arith.constant 24 : index
    %131 = vector.load %arg30[%c8_92, %c24_93] : memref<16x96xf32, #tpu.memory_space<vmem>>, vector<8x8xf32>
    %c8_94 = arith.constant 8 : index
    %c56_95 = arith.constant 56 : index
    %132 = vector.load %arg30[%c8_94, %c56_95] : memref<16x96xf32, #tpu.memory_space<vmem>>, vector<8x8xf32>
    %c8_96 = arith.constant 8 : index
    %c88_97 = arith.constant 88 : index
    %133 = vector.load %arg30[%c8_96, %c88_97] : memref<16x96xf32, #tpu.memory_space<vmem>>, vector<8x8xf32>
    %cst_98 = arith.constant dense<0.000000e+00> : vector<8x8xf32>
    %134 = tpu.matmul %131, %132, %cst_98 {dimension_numbers = #tpu.dot_dimension_numbers<[1], [1], [0], [0], [0, 0, 1, 0], [], []>} : vector<8x8xf32>, vector<8x8xf32>, vector<8x8xf32> -> vector<8x8xf32>
    %cst_99 = arith.constant 0.353553385 : f32
    %135 = vector.broadcast %cst_99 : f32 to vector<8x8xf32>
    %136 = arith.mulf %134, %135 : vector<8x8xf32>
    %cst_100 = arith.constant dense<0xFF800000> : vector<8xf32>
    %137 = vector.multi_reduction <maximumf>, %136, %cst_100 [1] : vector<8x8xf32> to vector<8xf32>
    %138 = vector.shape_cast %137 : vector<8xf32> to vector<8x1xf32>
    %139 = vector.broadcast %138 : vector<8x1xf32> to vector<8x8xf32>
    %140 = arith.subf %136, %139 : vector<8x8xf32>
    %141 = math.exp %140 : vector<8x8xf32>
    %cst_101 = arith.constant dense<0.000000e+00> : vector<8xf32>
    %142 = vector.multi_reduction <add>, %141, %cst_101 [1] : vector<8x8xf32> to vector<8xf32>
    %143 = vector.shape_cast %142 : vector<8xf32> to vector<8x1xf32>
    %144 = vector.broadcast %143 : vector<8x1xf32> to vector<8x8xf32>
    %145 = arith.divf %141, %144 : vector<8x8xf32>
    %cst_102 = arith.constant dense<0.000000e+00> : vector<8x8xf32>
    %146 = tpu.matmul %145, %133, %cst_102 {dimension_numbers = #tpu.dot_dimension_numbers<[1], [0], [0], [1], [0, 0, 1, 1], [], []>} : vector<8x8xf32>, vector<8x8xf32>, vector<8x8xf32> -> vector<8x8xf32>
    %c8_103 = arith.constant 8 : index
    %c24_104 = arith.constant 24 : index
    %147 = vector.load %arg31[%c8_103, %c24_104] : memref<16x32xf32, #tpu.memory_space<vmem>>, vector<8x8xf32>
    tpu.vector_store %arg31[%c8_103, %c24_104], %146 {strides = array<i32>} : memref<16x32xf32, #tpu.memory_space<vmem>>, vector<8x8xf32>,
    %c0_105 = arith.constant 0 : index
    %c0_106 = arith.constant 0 : index
    %148 = vector.load %arg31[%c0_105, %c0_106] : memref<16x32xf32, #tpu.memory_space<vmem>>, vector<16x32xf32>
    %c0_107 = arith.constant 0 : index
    %c0_108 = arith.constant 0 : index
    %149 = vector.load %arg5[%c0_107, %c0_108] : memref<32x32xf32, #tpu.memory_space<vmem>>, vector<32x32xf32>
    %cst_109 = arith.constant dense<0.000000e+00> : vector<16x32xf32>
    %150 = tpu.matmul %148, %149, %cst_109 {dimension_numbers = #tpu.dot_dimension_numbers<[1], [0], [0], [1], [0, 0, 1, 1], [], []>} : vector<16x32xf32>, vector<32x32xf32>, vector<16x32xf32> -> vector<16x32xf32>
    %c0_110 = arith.constant 0 : index
    %c0_111 = arith.constant 0 : index
    %151 = vector.load %arg6[%c0_110, %c0_111] : memref<1x32xf32, #tpu.memory_space<vmem>>, vector<1x32xf32>
    %152 = vector.broadcast %151 : vector<1x32xf32> to vector<16x32xf32>
    %153 = arith.addf %150, %152 : vector<16x32xf32>
    %154 = arith.addf %153, %5 : vector<16x32xf32>
    %c0_112 = arith.constant 0 : index
    %c0_113 = arith.constant 0 : index
    %155 = vector.load %arg7[%c0_112, %c0_113] : memref<1x32xf32, #tpu.memory_space<vmem>>, vector<1x32xf32>
    %c0_114 = arith.constant 0 : index
    %c0_115 = arith.constant 0 : index
    %156 = vector.load %arg8[%c0_114, %c0_115] : memref<1x32xf32, #tpu.memory_space<vmem>>, vector<1x32xf32>
    %cst_116 = arith.constant dense<0.000000e+00> : vector<16xf32>
    %157 = vector.multi_reduction <add>, %154, %cst_116 [1] : vector<16x32xf32> to vector<16xf32>
    %158 = vector.shape_cast %157 : vector<16xf32> to vector<16x1xf32>
    %cst_117 = arith.constant 3.200000e+01 : f32
    %159 = vector.broadcast %cst_117 : f32 to vector<16x1xf32>
    %160 = arith.divf %158, %159 : vector<16x1xf32>
    %161 = vector.broadcast %160 : vector<16x1xf32> to vector<16x32xf32>
    %162 = arith.subf %154, %161 : vector<16x32xf32>
    %163 = arith.mulf %162, %162 : vector<16x32xf32>
    %cst_118 = arith.constant dense<0.000000e+00> : vector<16xf32>
    %164 = vector.multi_reduction <add>, %163, %cst_118 [1] : vector<16x32xf32> to vector<16xf32>
    %165 = vector.shape_cast %164 : vector<16xf32> to vector<16x1xf32>
    %cst_119 = arith.constant 3.200000e+01 : f32
    %166 = vector.broadcast %cst_119 : f32 to vector<16x1xf32>
    %167 = arith.divf %165, %166 : vector<16x1xf32>
    %168 = vector.broadcast %160 : vector<16x1xf32> to vector<16x32xf32>
    %169 = arith.subf %154, %168 : vector<16x32xf32>
    %cst_120 = arith.constant 9.99999996E-13 : f32
    %170 = vector.broadcast %cst_120 : f32 to vector<16x1xf32>
    %171 = arith.addf %167, %170 : vector<16x1xf32>
    %172 = math.rsqrt %171 : vector<16x1xf32>
    %173 = vector.broadcast %172 : vector<16x1xf32> to vector<16x32xf32>
    %174 = arith.mulf %169, %173 : vector<16x32xf32>
    %175 = vector.broadcast %155 : vector<1x32xf32> to vector<16x32xf32>
    %176 = arith.mulf %174, %175 : vector<16x32xf32>
    %177 = vector.broadcast %156 : vector<1x32xf32> to vector<16x32xf32>
    %178 = arith.addf %176, %177 : vector<16x32xf32>
    %c0_121 = arith.constant 0 : index
    %c0_122 = arith.constant 0 : index
    %179 = vector.load %arg9[%c0_121, %c0_122] : memref<32x64xf32, #tpu.memory_space<vmem>>, vector<32x64xf32>
    %cst_123 = arith.constant dense<0.000000e+00> : vector<16x64xf32>
    %180 = tpu.matmul %178, %179, %cst_123 {dimension_numbers = #tpu.dot_dimension_numbers<[1], [0], [0], [1], [0, 0, 1, 1], [], []>} : vector<16x32xf32>, vector<32x64xf32>, vector<16x64xf32> -> vector<16x64xf32>
    %c0_124 = arith.constant 0 : index
    %c0_125 = arith.constant 0 : index
    %181 = vector.load %arg10[%c0_124, %c0_125] : memref<1x64xf32, #tpu.memory_space<vmem>>, vector<1x64xf32>
    %182 = vector.broadcast %181 : vector<1x64xf32> to vector<16x64xf32>
    %183 = arith.addf %180, %182 : vector<16x64xf32>
    %cst_126 = arith.constant 5.000000e-01 : f32
    %184 = vector.broadcast %cst_126 : f32 to vector<16x64xf32>
    %185 = arith.mulf %184, %183 : vector<16x64xf32>
    %cst_127 = arith.constant 4.471500e-02 : f32
    %186 = vector.broadcast %cst_127 : f32 to vector<16x64xf32>
    %187 = arith.mulf %186, %183 : vector<16x64xf32>
    %188 = arith.mulf %187, %183 : vector<16x64xf32>
    %189 = arith.mulf %188, %183 : vector<16x64xf32>
    %190 = arith.addf %183, %189 : vector<16x64xf32>
    %cst_128 = arith.constant 0.797884583 : f32
    %191 = vector.broadcast %cst_128 : f32 to vector<16x64xf32>
    %192 = arith.mulf %191, %190 : vector<16x64xf32>
    %193 = math.tanh %192 : vector<16x64xf32>
    %cst_129 = arith.constant 1.000000e+00 : f32
    %194 = vector.broadcast %cst_129 : f32 to vector<16x64xf32>
    %195 = arith.addf %194, %193 : vector<16x64xf32>
    %196 = arith.mulf %185, %195 : vector<16x64xf32>
    %c0_130 = arith.constant 0 : index
    %c0_131 = arith.constant 0 : index
    %197 = vector.load %arg11[%c0_130, %c0_131] : memref<64x32xf32, #tpu.memory_space<vmem>>, vector<64x32xf32>
    %cst_132 = arith.constant dense<0.000000e+00> : vector<16x32xf32>
    %198 = tpu.matmul %196, %197, %cst_132 {dimension_numbers = #tpu.dot_dimension_numbers<[1], [0], [0], [1], [0, 0, 1, 1], [], []>} : vector<16x64xf32>, vector<64x32xf32>, vector<16x32xf32> -> vector<16x32xf32>
    %c0_133 = arith.constant 0 : index
    %c0_134 = arith.constant 0 : index
    %199 = vector.load %arg12[%c0_133, %c0_134] : memref<1x32xf32, #tpu.memory_space<vmem>>, vector<1x32xf32>
    %200 = vector.broadcast %199 : vector<1x32xf32> to vector<16x32xf32>
    %201 = arith.addf %198, %200 : vector<16x32xf32>
    %202 = arith.addf %201, %178 : vector<16x32xf32>
    %c0_135 = arith.constant 0 : index
    %c0_136 = arith.constant 0 : index
    %203 = vector.load %arg13[%c0_135, %c0_136] : memref<1x32xf32, #tpu.memory_space<vmem>>, vector<1x32xf32>
    %c0_137 = arith.constant 0 : index
    %c0_138 = arith.constant 0 : index
    %204 = vector.load %arg14[%c0_137, %c0_138] : memref<1x32xf32, #tpu.memory_space<vmem>>, vector<1x32xf32>
    %cst_139 = arith.constant dense<0.000000e+00> : vector<16xf32>
    %205 = vector.multi_reduction <add>, %202, %cst_139 [1] : vector<16x32xf32> to vector<16xf32>
    %206 = vector.shape_cast %205 : vector<16xf32> to vector<16x1xf32>
    %cst_140 = arith.constant 3.200000e+01 : f32
    %207 = vector.broadcast %cst_140 : f32 to vector<16x1xf32>
    %208 = arith.divf %206, %207 : vector<16x1xf32>
    %209 = vector.broadcast %208 : vector<16x1xf32> to vector<16x32xf32>
    %210 = arith.subf %202, %209 : vector<16x32xf32>
    %211 = arith.mulf %210, %210 : vector<16x32xf32>
    %cst_141 = arith.constant dense<0.000000e+00> : vector<16xf32>
    %212 = vector.multi_reduction <add>, %211, %cst_141 [1] : vector<16x32xf32> to vector<16xf32>
    %213 = vector.shape_cast %212 : vector<16xf32> to vector<16x1xf32>
    %cst_142 = arith.constant 3.200000e+01 : f32
    %214 = vector.broadcast %cst_142 : f32 to vector<16x1xf32>
    %215 = arith.divf %213, %214 : vector<16x1xf32>
    %216 = vector.broadcast %208 : vector<16x1xf32> to vector<16x32xf32>
    %217 = arith.subf %202, %216 : vector<16x32xf32>
    %cst_143 = arith.constant 9.99999996E-13 : f32
    %218 = vector.broadcast %cst_143 : f32 to vector<16x1xf32>
    %219 = arith.addf %215, %218 : vector<16x1xf32>
    %220 = math.rsqrt %219 : vector<16x1xf32>
    %221 = vector.broadcast %220 : vector<16x1xf32> to vector<16x32xf32>
    %222 = arith.mulf %217, %221 : vector<16x32xf32>
    %223 = vector.broadcast %203 : vector<1x32xf32> to vector<16x32xf32>
    %224 = arith.mulf %222, %223 : vector<16x32xf32>
    %225 = vector.broadcast %204 : vector<1x32xf32> to vector<16x32xf32>
    %226 = arith.addf %224, %225 : vector<16x32xf32>
    %c0_144 = arith.constant 0 : index
    %c0_145 = arith.constant 0 : index
    %227 = vector.load %arg15[%c0_144, %c0_145] : memref<32x96xf32, #tpu.memory_space<vmem>>, vector<32x96xf32>
    %cst_146 = arith.constant dense<0.000000e+00> : vector<16x96xf32>
    %228 = tpu.matmul %226, %227, %cst_146 {dimension_numbers = #tpu.dot_dimension_numbers<[1], [0], [0], [1], [0, 0, 1, 1], [], []>} : vector<16x32xf32>, vector<32x96xf32>, vector<16x96xf32> -> vector<16x96xf32>
    %c0_147 = arith.constant 0 : index
    %c0_148 = arith.constant 0 : index
    %229 = vector.load %arg16[%c0_147, %c0_148] : memref<1x96xf32, #tpu.memory_space<vmem>>, vector<1x96xf32>
    %230 = vector.broadcast %229 : vector<1x96xf32> to vector<16x96xf32>
    %231 = arith.addf %228, %230 : vector<16x96xf32>
    %c0_149 = arith.constant 0 : index
    %c0_150 = arith.constant 0 : index
    %232 = vector.load %arg30[%c0_149, %c0_150] : memref<16x96xf32, #tpu.memory_space<vmem>>, vector<16x96xf32>
    tpu.vector_store %arg30[%c0_149, %c0_150], %231 {strides = array<i32>} : memref<16x96xf32, #tpu.memory_space<vmem>>, vector<16x96xf32>,
    %c0_151 = arith.constant 0 : index
    %c0_152 = arith.constant 0 : index
    %233 = vector.load %arg30[%c0_151, %c0_152] : memref<16x96xf32, #tpu.memory_space<vmem>>, vector<8x8xf32>
    %c0_153 = arith.constant 0 : index
    %c32_154 = arith.constant 32 : index
    %234 = vector.load %arg30[%c0_153, %c32_154] : memref<16x96xf32, #tpu.memory_space<vmem>>, vector<8x8xf32>
    %c0_155 = arith.constant 0 : index
    %c64_156 = arith.constant 64 : index
    %235 = vector.load %arg30[%c0_155, %c64_156] : memref<16x96xf32, #tpu.memory_space<vmem>>, vector<8x8xf32>
    %cst_157 = arith.constant dense<0.000000e+00> : vector<8x8xf32>
    %236 = tpu.matmul %233, %234, %cst_157 {dimension_numbers = #tpu.dot_dimension_numbers<[1], [1], [0], [0], [0, 0, 1, 0], [], []>} : vector<8x8xf32>, vector<8x8xf32>, vector<8x8xf32> -> vector<8x8xf32>
    %cst_158 = arith.constant 0.353553385 : f32
    %237 = vector.broadcast %cst_158 : f32 to vector<8x8xf32>
    %238 = arith.mulf %236, %237 : vector<8x8xf32>
    %cst_159 = arith.constant dense<0xFF800000> : vector<8xf32>
    %239 = vector.multi_reduction <maximumf>, %238, %cst_159 [1] : vector<8x8xf32> to vector<8xf32>
    %240 = vector.shape_cast %239 : vector<8xf32> to vector<8x1xf32>
    %241 = vector.broadcast %240 : vector<8x1xf32> to vector<8x8xf32>
    %242 = arith.subf %238, %241 : vector<8x8xf32>
    %243 = math.exp %242 : vector<8x8xf32>
    %cst_160 = arith.constant dense<0.000000e+00> : vector<8xf32>
    %244 = vector.multi_reduction <add>, %243, %cst_160 [1] : vector<8x8xf32> to vector<8xf32>
    %245 = vector.shape_cast %244 : vector<8xf32> to vector<8x1xf32>
    %246 = vector.broadcast %245 : vector<8x1xf32> to vector<8x8xf32>
    %247 = arith.divf %243, %246 : vector<8x8xf32>
    %cst_161 = arith.constant dense<0.000000e+00> : vector<8x8xf32>
    %248 = tpu.matmul %247, %235, %cst_161 {dimension_numbers = #tpu.dot_dimension_numbers<[1], [0], [0], [1], [0, 0, 1, 1], [], []>} : vector<8x8xf32>, vector<8x8xf32>, vector<8x8xf32> -> vector<8x8xf32>
    %c0_162 = arith.constant 0 : index
    %c0_163 = arith.constant 0 : index
    %249 = vector.load %arg31[%c0_162, %c0_163] : memref<16x32xf32, #tpu.memory_space<vmem>>, vector<8x8xf32>
    tpu.vector_store %arg31[%c0_162, %c0_163], %248 {strides = array<i32>} : memref<16x32xf32, #tpu.memory_space<vmem>>, vector<8x8xf32>,
    %c0_164 = arith.constant 0 : index
    %c8_165 = arith.constant 8 : index
    %250 = vector.load %arg30[%c0_164, %c8_165] : memref<16x96xf32, #tpu.memory_space<vmem>>, vector<8x8xf32>
    %c0_166 = arith.constant 0 : index
    %c40_167 = arith.constant 40 : index
    %251 = vector.load %arg30[%c0_166, %c40_167] : memref<16x96xf32, #tpu.memory_space<vmem>>, vector<8x8xf32>
    %c0_168 = arith.constant 0 : index
    %c72_169 = arith.constant 72 : index
    %252 = vector.load %arg30[%c0_168, %c72_169] : memref<16x96xf32, #tpu.memory_space<vmem>>, vector<8x8xf32>
    %cst_170 = arith.constant dense<0.000000e+00> : vector<8x8xf32>
    %253 = tpu.matmul %250, %251, %cst_170 {dimension_numbers = #tpu.dot_dimension_numbers<[1], [1], [0], [0], [0, 0, 1, 0], [], []>} : vector<8x8xf32>, vector<8x8xf32>, vector<8x8xf32> -> vector<8x8xf32>
    %cst_171 = arith.constant 0.353553385 : f32
    %254 = vector.broadcast %cst_171 : f32 to vector<8x8xf32>
    %255 = arith.mulf %253, %254 : vector<8x8xf32>
    %cst_172 = arith.constant dense<0xFF800000> : vector<8xf32>
    %256 = vector.multi_reduction <maximumf>, %255, %cst_172 [1] : vector<8x8xf32> to vector<8xf32>
    %257 = vector.shape_cast %256 : vector<8xf32> to vector<8x1xf32>
    %258 = vector.broadcast %257 : vector<8x1xf32> to vector<8x8xf32>
    %259 = arith.subf %255, %258 : vector<8x8xf32>
    %260 = math.exp %259 : vector<8x8xf32>
    %cst_173 = arith.constant dense<0.000000e+00> : vector<8xf32>
    %261 = vector.multi_reduction <add>, %260, %cst_173 [1] : vector<8x8xf32> to vector<8xf32>
    %262 = vector.shape_cast %261 : vector<8xf32> to vector<8x1xf32>
    %263 = vector.broadcast %262 : vector<8x1xf32> to vector<8x8xf32>
    %264 = arith.divf %260, %263 : vector<8x8xf32>
    %cst_174 = arith.constant dense<0.000000e+00> : vector<8x8xf32>
    %265 = tpu.matmul %264, %252, %cst_174 {dimension_numbers = #tpu.dot_dimension_numbers<[1], [0], [0], [1], [0, 0, 1, 1], [], []>} : vector<8x8xf32>, vector<8x8xf32>, vector<8x8xf32> -> vector<8x8xf32>
    %c0_175 = arith.constant 0 : index
    %c8_176 = arith.constant 8 : index
    %266 = vector.load %arg31[%c0_175, %c8_176] : memref<16x32xf32, #tpu.memory_space<vmem>>, vector<8x8xf32>
    tpu.vector_store %arg31[%c0_175, %c8_176], %265 {strides = array<i32>} : memref<16x32xf32, #tpu.memory_space<vmem>>, vector<8x8xf32>,
    %c0_177 = arith.constant 0 : index
    %c16_178 = arith.constant 16 : index
    %267 = vector.load %arg30[%c0_177, %c16_178] : memref<16x96xf32, #tpu.memory_space<vmem>>, vector<8x8xf32>
    %c0_179 = arith.constant 0 : index
    %c48_180 = arith.constant 48 : index
    %268 = vector.load %arg30[%c0_179, %c48_180] : memref<16x96xf32, #tpu.memory_space<vmem>>, vector<8x8xf32>
    %c0_181 = arith.constant 0 : index
    %c80_182 = arith.constant 80 : index
    %269 = vector.load %arg30[%c0_181, %c80_182] : memref<16x96xf32, #tpu.memory_space<vmem>>, vector<8x8xf32>
    %cst_183 = arith.constant dense<0.000000e+00> : vector<8x8xf32>
    %270 = tpu.matmul %267, %268, %cst_183 {dimension_numbers = #tpu.dot_dimension_numbers<[1], [1], [0], [0], [0, 0, 1, 0], [], []>} : vector<8x8xf32>, vector<8x8xf32>, vector<8x8xf32> -> vector<8x8xf32>
    %cst_184 = arith.constant 0.353553385 : f32
    %271 = vector.broadcast %cst_184 : f32 to vector<8x8xf32>
    %272 = arith.mulf %270, %271 : vector<8x8xf32>
    %cst_185 = arith.constant dense<0xFF800000> : vector<8xf32>
    %273 = vector.multi_reduction <maximumf>, %272, %cst_185 [1] : vector<8x8xf32> to vector<8xf32>
    %274 = vector.shape_cast %273 : vector<8xf32> to vector<8x1xf32>
    %275 = vector.broadcast %274 : vector<8x1xf32> to vector<8x8xf32>
    %276 = arith.subf %272, %275 : vector<8x8xf32>
    %277 = math.exp %276 : vector<8x8xf32>
    %cst_186 = arith.constant dense<0.000000e+00> : vector<8xf32>
    %278 = vector.multi_reduction <add>, %277, %cst_186 [1] : vector<8x8xf32> to vector<8xf32>
    %279 = vector.shape_cast %278 : vector<8xf32> to vector<8x1xf32>
    %280 = vector.broadcast %279 : vector<8x1xf32> to vector<8x8xf32>
    %281 = arith.divf %277, %280 : vector<8x8xf32>
    %cst_187 = arith.constant dense<0.000000e+00> : vector<8x8xf32>
    %282 = tpu.matmul %281, %269, %cst_187 {dimension_numbers = #tpu.dot_dimension_numbers<[1], [0], [0], [1], [0, 0, 1, 1], [], []>} : vector<8x8xf32>, vector<8x8xf32>, vector<8x8xf32> -> vector<8x8xf32>
    %c0_188 = arith.constant 0 : index
    %c16_189 = arith.constant 16 : index
    %283 = vector.load %arg31[%c0_188, %c16_189] : memref<16x32xf32, #tpu.memory_space<vmem>>, vector<8x8xf32>
    tpu.vector_store %arg31[%c0_188, %c16_189], %282 {strides = array<i32>} : memref<16x32xf32, #tpu.memory_space<vmem>>, vector<8x8xf32>,
    %c0_190 = arith.constant 0 : index
    %c24_191 = arith.constant 24 : index
    %284 = vector.load %arg30[%c0_190, %c24_191] : memref<16x96xf32, #tpu.memory_space<vmem>>, vector<8x8xf32>
    %c0_192 = arith.constant 0 : index
    %c56_193 = arith.constant 56 : index
    %285 = vector.load %arg30[%c0_192, %c56_193] : memref<16x96xf32, #tpu.memory_space<vmem>>, vector<8x8xf32>
    %c0_194 = arith.constant 0 : index
    %c88_195 = arith.constant 88 : index
    %286 = vector.load %arg30[%c0_194, %c88_195] : memref<16x96xf32, #tpu.memory_space<vmem>>, vector<8x8xf32>
    %cst_196 = arith.constant dense<0.000000e+00> : vector<8x8xf32>
    %287 = tpu.matmul %284, %285, %cst_196 {dimension_numbers = #tpu.dot_dimension_numbers<[1], [1], [0], [0], [0, 0, 1, 0], [], []>} : vector<8x8xf32>, vector<8x8xf32>, vector<8x8xf32> -> vector<8x8xf32>
    %cst_197 = arith.constant 0.353553385 : f32
    %288 = vector.broadcast %cst_197 : f32 to vector<8x8xf32>
    %289 = arith.mulf %287, %288 : vector<8x8xf32>
    %cst_198 = arith.constant dense<0xFF800000> : vector<8xf32>
    %290 = vector.multi_reduction <maximumf>, %289, %cst_198 [1] : vector<8x8xf32> to vector<8xf32>
    %291 = vector.shape_cast %290 : vector<8xf32> to vector<8x1xf32>
    %292 = vector.broadcast %291 : vector<8x1xf32> to vector<8x8xf32>
    %293 = arith.subf %289, %292 : vector<8x8xf32>
    %294 = math.exp %293 : vector<8x8xf32>
    %cst_199 = arith.constant dense<0.000000e+00> : vector<8xf32>
    %295 = vector.multi_reduction <add>, %294, %cst_199 [1] : vector<8x8xf32> to vector<8xf32>
    %296 = vector.shape_cast %295 : vector<8xf32> to vector<8x1xf32>
    %297 = vector.broadcast %296 : vector<8x1xf32> to vector<8x8xf32>
    %298 = arith.divf %294, %297 : vector<8x8xf32>
    %cst_200 = arith.constant dense<0.000000e+00> : vector<8x8xf32>
    %299 = tpu.matmul %298, %286, %cst_200 {dimension_numbers = #tpu.dot_dimension_numbers<[1], [0], [0], [1], [0, 0, 1, 1], [], []>} : vector<8x8xf32>, vector<8x8xf32>, vector<8x8xf32> -> vector<8x8xf32>
    %c0_201 = arith.constant 0 : index
    %c24_202 = arith.constant 24 : index
    %300 = vector.load %arg31[%c0_201, %c24_202] : memref<16x32xf32, #tpu.memory_space<vmem>>, vector<8x8xf32>
    tpu.vector_store %arg31[%c0_201, %c24_202], %299 {strides = array<i32>} : memref<16x32xf32, #tpu.memory_space<vmem>>, vector<8x8xf32>,
    %c8_203 = arith.constant 8 : index
    %c0_204 = arith.constant 0 : index
    %301 = vector.load %arg30[%c8_203, %c0_204] : memref<16x96xf32, #tpu.memory_space<vmem>>, vector<8x8xf32>
    %c8_205 = arith.constant 8 : index
    %c32_206 = arith.constant 32 : index
    %302 = vector.load %arg30[%c8_205, %c32_206] : memref<16x96xf32, #tpu.memory_space<vmem>>, vector<8x8xf32>
    %c8_207 = arith.constant 8 : index
    %c64_208 = arith.constant 64 : index
    %303 = vector.load %arg30[%c8_207, %c64_208] : memref<16x96xf32, #tpu.memory_space<vmem>>, vector<8x8xf32>
    %cst_209 = arith.constant dense<0.000000e+00> : vector<8x8xf32>
    %304 = tpu.matmul %301, %302, %cst_209 {dimension_numbers = #tpu.dot_dimension_numbers<[1], [1], [0], [0], [0, 0, 1, 0], [], []>} : vector<8x8xf32>, vector<8x8xf32>, vector<8x8xf32> -> vector<8x8xf32>
    %cst_210 = arith.constant 0.353553385 : f32
    %305 = vector.broadcast %cst_210 : f32 to vector<8x8xf32>
    %306 = arith.mulf %304, %305 : vector<8x8xf32>
    %cst_211 = arith.constant dense<0xFF800000> : vector<8xf32>
    %307 = vector.multi_reduction <maximumf>, %306, %cst_211 [1] : vector<8x8xf32> to vector<8xf32>
    %308 = vector.shape_cast %307 : vector<8xf32> to vector<8x1xf32>
    %309 = vector.broadcast %308 : vector<8x1xf32> to vector<8x8xf32>
    %310 = arith.subf %306, %309 : vector<8x8xf32>
    %311 = math.exp %310 : vector<8x8xf32>
    %cst_212 = arith.constant dense<0.000000e+00> : vector<8xf32>
    %312 = vector.multi_reduction <add>, %311, %cst_212 [1] : vector<8x8xf32> to vector<8xf32>
    %313 = vector.shape_cast %312 : vector<8xf32> to vector<8x1xf32>
    %314 = vector.broadcast %313 : vector<8x1xf32> to vector<8x8xf32>
    %315 = arith.divf %311, %314 : vector<8x8xf32>
    %cst_213 = arith.constant dense<0.000000e+00> : vector<8x8xf32>
    %316 = tpu.matmul %315, %303, %cst_213 {dimension_numbers = #tpu.dot_dimension_numbers<[1], [0], [0], [1], [0, 0, 1, 1], [], []>} : vector<8x8xf32>, vector<8x8xf32>, vector<8x8xf32> -> vector<8x8xf32>
    %c8_214 = arith.constant 8 : index
    %c0_215 = arith.constant 0 : index
    %317 = vector.load %arg31[%c8_214, %c0_215] : memref<16x32xf32, #tpu.memory_space<vmem>>, vector<8x8xf32>
    tpu.vector_store %arg31[%c8_214, %c0_215], %316 {strides = array<i32>} : memref<16x32xf32, #tpu.memory_space<vmem>>, vector<8x8xf32>,
    %c8_216 = arith.constant 8 : index
    %c8_217 = arith.constant 8 : index
    %318 = vector.load %arg30[%c8_216, %c8_217] : memref<16x96xf32, #tpu.memory_space<vmem>>, vector<8x8xf32>
    %c8_218 = arith.constant 8 : index
    %c40_219 = arith.constant 40 : index
    %319 = vector.load %arg30[%c8_218, %c40_219] : memref<16x96xf32, #tpu.memory_space<vmem>>, vector<8x8xf32>
    %c8_220 = arith.constant 8 : index
    %c72_221 = arith.constant 72 : index
    %320 = vector.load %arg30[%c8_220, %c72_221] : memref<16x96xf32, #tpu.memory_space<vmem>>, vector<8x8xf32>
    %cst_222 = arith.constant dense<0.000000e+00> : vector<8x8xf32>
    %321 = tpu.matmul %318, %319, %cst_222 {dimension_numbers = #tpu.dot_dimension_numbers<[1], [1], [0], [0], [0, 0, 1, 0], [], []>} : vector<8x8xf32>, vector<8x8xf32>, vector<8x8xf32> -> vector<8x8xf32>
    %cst_223 = arith.constant 0.353553385 : f32
    %322 = vector.broadcast %cst_223 : f32 to vector<8x8xf32>
    %323 = arith.mulf %321, %322 : vector<8x8xf32>
    %cst_224 = arith.constant dense<0xFF800000> : vector<8xf32>
    %324 = vector.multi_reduction <maximumf>, %323, %cst_224 [1] : vector<8x8xf32> to vector<8xf32>
    %325 = vector.shape_cast %324 : vector<8xf32> to vector<8x1xf32>
    %326 = vector.broadcast %325 : vector<8x1xf32> to vector<8x8xf32>
    %327 = arith.subf %323, %326 : vector<8x8xf32>
    %328 = math.exp %327 : vector<8x8xf32>
    %cst_225 = arith.constant dense<0.000000e+00> : vector<8xf32>
    %329 = vector.multi_reduction <add>, %328, %cst_225 [1] : vector<8x8xf32> to vector<8xf32>
    %330 = vector.shape_cast %329 : vector<8xf32> to vector<8x1xf32>
    %331 = vector.broadcast %330 : vector<8x1xf32> to vector<8x8xf32>
    %332 = arith.divf %328, %331 : vector<8x8xf32>
    %cst_226 = arith.constant dense<0.000000e+00> : vector<8x8xf32>
    %333 = tpu.matmul %332, %320, %cst_226 {dimension_numbers = #tpu.dot_dimension_numbers<[1], [0], [0], [1], [0, 0, 1, 1], [], []>} : vector<8x8xf32>, vector<8x8xf32>, vector<8x8xf32> -> vector<8x8xf32>
    %c8_227 = arith.constant 8 : index
    %c8_228 = arith.constant 8 : index
    %334 = vector.load %arg31[%c8_227, %c8_228] : memref<16x32xf32, #tpu.memory_space<vmem>>, vector<8x8xf32>
    tpu.vector_store %arg31[%c8_227, %c8_228], %333 {strides = array<i32>} : memref<16x32xf32, #tpu.memory_space<vmem>>, vector<8x8xf32>,
    %c8_229 = arith.constant 8 : index
    %c16_230 = arith.constant 16 : index
    %335 = vector.load %arg30[%c8_229, %c16_230] : memref<16x96xf32, #tpu.memory_space<vmem>>, vector<8x8xf32>
    %c8_231 = arith.constant 8 : index
    %c48_232 = arith.constant 48 : index
    %336 = vector.load %arg30[%c8_231, %c48_232] : memref<16x96xf32, #tpu.memory_space<vmem>>, vector<8x8xf32>
    %c8_233 = arith.constant 8 : index
    %c80_234 = arith.constant 80 : index
    %337 = vector.load %arg30[%c8_233, %c80_234] : memref<16x96xf32, #tpu.memory_space<vmem>>, vector<8x8xf32>
    %cst_235 = arith.constant dense<0.000000e+00> : vector<8x8xf32>
    %338 = tpu.matmul %335, %336, %cst_235 {dimension_numbers = #tpu.dot_dimension_numbers<[1], [1], [0], [0], [0, 0, 1, 0], [], []>} : vector<8x8xf32>, vector<8x8xf32>, vector<8x8xf32> -> vector<8x8xf32>
    %cst_236 = arith.constant 0.353553385 : f32
    %339 = vector.broadcast %cst_236 : f32 to vector<8x8xf32>
    %340 = arith.mulf %338, %339 : vector<8x8xf32>
    %cst_237 = arith.constant dense<0xFF800000> : vector<8xf32>
    %341 = vector.multi_reduction <maximumf>, %340, %cst_237 [1] : vector<8x8xf32> to vector<8xf32>
    %342 = vector.shape_cast %341 : vector<8xf32> to vector<8x1xf32>
    %343 = vector.broadcast %342 : vector<8x1xf32> to vector<8x8xf32>
    %344 = arith.subf %340, %343 : vector<8x8xf32>
    %345 = math.exp %344 : vector<8x8xf32>
    %cst_238 = arith.constant dense<0.000000e+00> : vector<8xf32>
    %346 = vector.multi_reduction <add>, %345, %cst_238 [1] : vector<8x8xf32> to vector<8xf32>
    %347 = vector.shape_cast %346 : vector<8xf32> to vector<8x1xf32>
    %348 = vector.broadcast %347 : vector<8x1xf32> to vector<8x8xf32>
    %349 = arith.divf %345, %348 : vector<8x8xf32>
    %cst_239 = arith.constant dense<0.000000e+00> : vector<8x8xf32>
    %350 = tpu.matmul %349, %337, %cst_239 {dimension_numbers = #tpu.dot_dimension_numbers<[1], [0], [0], [1], [0, 0, 1, 1], [], []>} : vector<8x8xf32>, vector<8x8xf32>, vector<8x8xf32> -> vector<8x8xf32>
    %c8_240 = arith.constant 8 : index
    %c16_241 = arith.constant 16 : index
    %351 = vector.load %arg31[%c8_240, %c16_241] : memref<16x32xf32, #tpu.memory_space<vmem>>, vector<8x8xf32>
    tpu.vector_store %arg31[%c8_240, %c16_241], %350 {strides = array<i32>} : memref<16x32xf32, #tpu.memory_space<vmem>>, vector<8x8xf32>,
    %c8_242 = arith.constant 8 : index
    %c24_243 = arith.constant 24 : index
    %352 = vector.load %arg30[%c8_242, %c24_243] : memref<16x96xf32, #tpu.memory_space<vmem>>, vector<8x8xf32>
    %c8_244 = arith.constant 8 : index
    %c56_245 = arith.constant 56 : index
    %353 = vector.load %arg30[%c8_244, %c56_245] : memref<16x96xf32, #tpu.memory_space<vmem>>, vector<8x8xf32>
    %c8_246 = arith.constant 8 : index
    %c88_247 = arith.constant 88 : index
    %354 = vector.load %arg30[%c8_246, %c88_247] : memref<16x96xf32, #tpu.memory_space<vmem>>, vector<8x8xf32>
    %cst_248 = arith.constant dense<0.000000e+00> : vector<8x8xf32>
    %355 = tpu.matmul %352, %353, %cst_248 {dimension_numbers = #tpu.dot_dimension_numbers<[1], [1], [0], [0], [0, 0, 1, 0], [], []>} : vector<8x8xf32>, vector<8x8xf32>, vector<8x8xf32> -> vector<8x8xf32>
    %cst_249 = arith.constant 0.353553385 : f32
    %356 = vector.broadcast %cst_249 : f32 to vector<8x8xf32>
    %357 = arith.mulf %355, %356 : vector<8x8xf32>
    %cst_250 = arith.constant dense<0xFF800000> : vector<8xf32>
    %358 = vector.multi_reduction <maximumf>, %357, %cst_250 [1] : vector<8x8xf32> to vector<8xf32>
    %359 = vector.shape_cast %358 : vector<8xf32> to vector<8x1xf32>
    %360 = vector.broadcast %359 : vector<8x1xf32> to vector<8x8xf32>
    %361 = arith.subf %357, %360 : vector<8x8xf32>
    %362 = math.exp %361 : vector<8x8xf32>
    %cst_251 = arith.constant dense<0.000000e+00> : vector<8xf32>
    %363 = vector.multi_reduction <add>, %362, %cst_251 [1] : vector<8x8xf32> to vector<8xf32>
    %364 = vector.shape_cast %363 : vector<8xf32> to vector<8x1xf32>
    %365 = vector.broadcast %364 : vector<8x1xf32> to vector<8x8xf32>
    %366 = arith.divf %362, %365 : vector<8x8xf32>
    %cst_252 = arith.constant dense<0.000000e+00> : vector<8x8xf32>
    %367 = tpu.matmul %366, %354, %cst_252 {dimension_numbers = #tpu.dot_dimension_numbers<[1], [0], [0], [1], [0, 0, 1, 1], [], []>} : vector<8x8xf32>, vector<8x8xf32>, vector<8x8xf32> -> vector<8x8xf32>
    %c8_253 = arith.constant 8 : index
    %c24_254 = arith.constant 24 : index
    %368 = vector.load %arg31[%c8_253, %c24_254] : memref<16x32xf32, #tpu.memory_space<vmem>>, vector<8x8xf32>
    tpu.vector_store %arg31[%c8_253, %c24_254], %367 {strides = array<i32>} : memref<16x32xf32, #tpu.memory_space<vmem>>, vector<8x8xf32>,
    %c0_255 = arith.constant 0 : index
    %c0_256 = arith.constant 0 : index
    %369 = vector.load %arg31[%c0_255, %c0_256] : memref<16x32xf32, #tpu.memory_space<vmem>>, vector<16x32xf32>
    %c0_257 = arith.constant 0 : index
    %c0_258 = arith.constant 0 : index
    %370 = vector.load %arg17[%c0_257, %c0_258] : memref<32x32xf32, #tpu.memory_space<vmem>>, vector<32x32xf32>
    %cst_259 = arith.constant dense<0.000000e+00> : vector<16x32xf32>
    %371 = tpu.matmul %369, %370, %cst_259 {dimension_numbers = #tpu.dot_dimension_numbers<[1], [0], [0], [1], [0, 0, 1, 1], [], []>} : vector<16x32xf32>, vector<32x32xf32>, vector<16x32xf32> -> vector<16x32xf32>
    %c0_260 = arith.constant 0 : index
    %c0_261 = arith.constant 0 : index
    %372 = vector.load %arg18[%c0_260, %c0_261] : memref<1x32xf32, #tpu.memory_space<vmem>>, vector<1x32xf32>
    %373 = vector.broadcast %372 : vector<1x32xf32> to vector<16x32xf32>
    %374 = arith.addf %371, %373 : vector<16x32xf32>
    %375 = arith.addf %374, %226 : vector<16x32xf32>
    %c0_262 = arith.constant 0 : index
    %c0_263 = arith.constant 0 : index
    %376 = vector.load %arg19[%c0_262, %c0_263] : memref<1x32xf32, #tpu.memory_space<vmem>>, vector<1x32xf32>
    %c0_264 = arith.constant 0 : index
    %c0_265 = arith.constant 0 : index
    %377 = vector.load %arg20[%c0_264, %c0_265] : memref<1x32xf32, #tpu.memory_space<vmem>>, vector<1x32xf32>
    %cst_266 = arith.constant dense<0.000000e+00> : vector<16xf32>
    %378 = vector.multi_reduction <add>, %375, %cst_266 [1] : vector<16x32xf32> to vector<16xf32>
    %379 = vector.shape_cast %378 : vector<16xf32> to vector<16x1xf32>
    %cst_267 = arith.constant 3.200000e+01 : f32
    %380 = vector.broadcast %cst_267 : f32 to vector<16x1xf32>
    %381 = arith.divf %379, %380 : vector<16x1xf32>
    %382 = vector.broadcast %381 : vector<16x1xf32> to vector<16x32xf32>
    %383 = arith.subf %375, %382 : vector<16x32xf32>
    %384 = arith.mulf %383, %383 : vector<16x32xf32>
    %cst_268 = arith.constant dense<0.000000e+00> : vector<16xf32>
    %385 = vector.multi_reduction <add>, %384, %cst_268 [1] : vector<16x32xf32> to vector<16xf32>
    %386 = vector.shape_cast %385 : vector<16xf32> to vector<16x1xf32>
    %cst_269 = arith.constant 3.200000e+01 : f32
    %387 = vector.broadcast %cst_269 : f32 to vector<16x1xf32>
    %388 = arith.divf %386, %387 : vector<16x1xf32>
    %389 = vector.broadcast %381 : vector<16x1xf32> to vector<16x32xf32>
    %390 = arith.subf %375, %389 : vector<16x32xf32>
    %cst_270 = arith.constant 9.99999996E-13 : f32
    %391 = vector.broadcast %cst_270 : f32 to vector<16x1xf32>
    %392 = arith.addf %388, %391 : vector<16x1xf32>
    %393 = math.rsqrt %392 : vector<16x1xf32>
    %394 = vector.broadcast %393 : vector<16x1xf32> to vector<16x32xf32>
    %395 = arith.mulf %390, %394 : vector<16x32xf32>
    %396 = vector.broadcast %376 : vector<1x32xf32> to vector<16x32xf32>
    %397 = arith.mulf %395, %396 : vector<16x32xf32>
    %398 = vector.broadcast %377 : vector<1x32xf32> to vector<16x32xf32>
    %399 = arith.addf %397, %398 : vector<16x32xf32>
    %c0_271 = arith.constant 0 : index
    %c0_272 = arith.constant 0 : index
    %400 = vector.load %arg21[%c0_271, %c0_272] : memref<32x64xf32, #tpu.memory_space<vmem>>, vector<32x64xf32>
    %cst_273 = arith.constant dense<0.000000e+00> : vector<16x64xf32>
    %401 = tpu.matmul %399, %400, %cst_273 {dimension_numbers = #tpu.dot_dimension_numbers<[1], [0], [0], [1], [0, 0, 1, 1], [], []>} : vector<16x32xf32>, vector<32x64xf32>, vector<16x64xf32> -> vector<16x64xf32>
    %c0_274 = arith.constant 0 : index
    %c0_275 = arith.constant 0 : index
    %402 = vector.load %arg22[%c0_274, %c0_275] : memref<1x64xf32, #tpu.memory_space<vmem>>, vector<1x64xf32>
    %403 = vector.broadcast %402 : vector<1x64xf32> to vector<16x64xf32>
    %404 = arith.addf %401, %403 : vector<16x64xf32>
    %cst_276 = arith.constant 5.000000e-01 : f32
    %405 = vector.broadcast %cst_276 : f32 to vector<16x64xf32>
    %406 = arith.mulf %405, %404 : vector<16x64xf32>
    %cst_277 = arith.constant 4.471500e-02 : f32
    %407 = vector.broadcast %cst_277 : f32 to vector<16x64xf32>
    %408 = arith.mulf %407, %404 : vector<16x64xf32>
    %409 = arith.mulf %408, %404 : vector<16x64xf32>
    %410 = arith.mulf %409, %404 : vector<16x64xf32>
    %411 = arith.addf %404, %410 : vector<16x64xf32>
    %cst_278 = arith.constant 0.797884583 : f32
    %412 = vector.broadcast %cst_278 : f32 to vector<16x64xf32>
    %413 = arith.mulf %412, %411 : vector<16x64xf32>
    %414 = math.tanh %413 : vector<16x64xf32>
    %cst_279 = arith.constant 1.000000e+00 : f32
    %415 = vector.broadcast %cst_279 : f32 to vector<16x64xf32>
    %416 = arith.addf %415, %414 : vector<16x64xf32>
    %417 = arith.mulf %406, %416 : vector<16x64xf32>
    %c0_280 = arith.constant 0 : index
    %c0_281 = arith.constant 0 : index
    %418 = vector.load %arg23[%c0_280, %c0_281] : memref<64x32xf32, #tpu.memory_space<vmem>>, vector<64x32xf32>
    %cst_282 = arith.constant dense<0.000000e+00> : vector<16x32xf32>
    %419 = tpu.matmul %417, %418, %cst_282 {dimension_numbers = #tpu.dot_dimension_numbers<[1], [0], [0], [1], [0, 0, 1, 1], [], []>} : vector<16x64xf32>, vector<64x32xf32>, vector<16x32xf32> -> vector<16x32xf32>
    %c0_283 = arith.constant 0 : index
    %c0_284 = arith.constant 0 : index
    %420 = vector.load %arg24[%c0_283, %c0_284] : memref<1x32xf32, #tpu.memory_space<vmem>>, vector<1x32xf32>
    %421 = vector.broadcast %420 : vector<1x32xf32> to vector<16x32xf32>
    %422 = arith.addf %419, %421 : vector<16x32xf32>
    %423 = arith.addf %422, %399 : vector<16x32xf32>
    %c0_285 = arith.constant 0 : index
    %c0_286 = arith.constant 0 : index
    %424 = vector.load %arg25[%c0_285, %c0_286] : memref<1x32xf32, #tpu.memory_space<vmem>>, vector<1x32xf32>
    %c0_287 = arith.constant 0 : index
    %c0_288 = arith.constant 0 : index
    %425 = vector.load %arg26[%c0_287, %c0_288] : memref<1x32xf32, #tpu.memory_space<vmem>>, vector<1x32xf32>
    %cst_289 = arith.constant dense<0.000000e+00> : vector<16xf32>
    %426 = vector.multi_reduction <add>, %423, %cst_289 [1] : vector<16x32xf32> to vector<16xf32>
    %427 = vector.shape_cast %426 : vector<16xf32> to vector<16x1xf32>
    %cst_290 = arith.constant 3.200000e+01 : f32
    %428 = vector.broadcast %cst_290 : f32 to vector<16x1xf32>
    %429 = arith.divf %427, %428 : vector<16x1xf32>
    %430 = vector.broadcast %429 : vector<16x1xf32> to vector<16x32xf32>
    %431 = arith.subf %423, %430 : vector<16x32xf32>
    %432 = arith.mulf %431, %431 : vector<16x32xf32>
    %cst_291 = arith.constant dense<0.000000e+00> : vector<16xf32>
    %433 = vector.multi_reduction <add>, %432, %cst_291 [1] : vector<16x32xf32> to vector<16xf32>
    %434 = vector.shape_cast %433 : vector<16xf32> to vector<16x1xf32>
    %cst_292 = arith.constant 3.200000e+01 : f32
    %435 = vector.broadcast %cst_292 : f32 to vector<16x1xf32>
    %436 = arith.divf %434, %435 : vector<16x1xf32>
    %437 = vector.broadcast %429 : vector<16x1xf32> to vector<16x32xf32>
    %438 = arith.subf %423, %437 : vector<16x32xf32>
    %cst_293 = arith.constant 9.99999996E-13 : f32
    %439 = vector.broadcast %cst_293 : f32 to vector<16x1xf32>
    %440 = arith.addf %436, %439 : vector<16x1xf32>
    %441 = math.rsqrt %440 : vector<16x1xf32>
    %442 = vector.broadcast %441 : vector<16x1xf32> to vector<16x32xf32>
    %443 = arith.mulf %438, %442 : vector<16x32xf32>
    %444 = vector.broadcast %424 : vector<1x32xf32> to vector<16x32xf32>
    %445 = arith.mulf %443, %444 : vector<16x32xf32>
    %446 = vector.broadcast %425 : vector<1x32xf32> to vector<16x32xf32>
    %447 = arith.addf %445, %446 : vector<16x32xf32>
    %c0_294 = arith.constant 0 : index
    %c0_295 = arith.constant 0 : index
    %448 = vector.load %arg27[%c0_294, %c0_295] : memref<32x16xf32, #tpu.memory_space<vmem>>, vector<32x16xf32>
    %cst_296 = arith.constant dense<0.000000e+00> : vector<16x16xf32>
    %449 = tpu.matmul %447, %448, %cst_296 {dimension_numbers = #tpu.dot_dimension_numbers<[1], [0], [0], [1], [0, 0, 1, 1], [], []>} : vector<16x32xf32>, vector<32x16xf32>, vector<16x16xf32> -> vector<16x16xf32>
    %c0_297 = arith.constant 0 : index
    %c0_298 = arith.constant 0 : index
    %450 = vector.load %arg28[%c0_297, %c0_298] : memref<1x16xf32, #tpu.memory_space<vmem>>, vector<1x16xf32>
    %451 = vector.broadcast %450 : vector<1x16xf32> to vector<16x16xf32>
    %452 = arith.addf %449, %451 : vector<16x16xf32>
    %c0_299 = arith.constant 0 : index
    %c0_300 = arith.constant 0 : index
    %453 = vector.load %arg29[%c0_299, %c0_300] : memref<16x16xf32, #tpu.memory_space<vmem>>, vector<16x16xf32>
    tpu.vector_store %arg29[%c0_299, %c0_300], %452 {strides = array<i32>} : memref<16x16xf32, #tpu.memory_space<vmem>>, vector<16x16xf32>,
    return
  }
}

</mosaic_0001>

<bundles_post_ra>
// kernel: mini_bert_ae_forward.1
= control target key start
LH: loop header
LB: loop body
LE: loop exit
PB: predicated region body
PF: predicated region fallthrough
CT: control target
= control target key end

     0   :  { %s5050_s6 = smov 1   ;;  %s5051_s10 = smov 2   ;;  %s5751_s0 = inlined_call_operand.smem [shape: u32[30], index: -1, kind: input, shape index: {}] }
   0x1   :  { %s5111_s5 = sld [smem:[%s5751_s0]]   ;;  %s5052_s14 = smov 3  }
   0x2   :  { %s5116_s9 = sld [smem:[%s5751_s0 + %s5050_s6]]   ;;  %s5053_s18 = smov 4  }
   0x3   :  { %s5121_s13 = sld [smem:[%s5751_s0 + %s5051_s10]]   ;;  %s5054_s22 = smov 5  }
   0x4   :  { %s5126_s17 = sld [smem:[%s5751_s0 + %s5052_s14]]   ;;  %s5055_s26 = smov 6  }
   0x5   :  { %s5131_s21 = sld [smem:[%s5751_s0 + %s5053_s18]]   ;;  %s5056_s30 = smov 7  }
   0x6   :  { %s5136_s25 = sld [smem:[%s5751_s0 + %s5054_s22]]   ;;  %s5057_s4 = smov 8  }
   0x7   :  { %s5141_s29 = sld [smem:[%s5751_s0 + %s5055_s26]]   ;;  %s5058_s10 = smov 9  }
   0x8   :  { %s5146_s3 = sld [smem:[%s5751_s0 + %s5056_s30]]   ;;  %s5059_s15 = smov 10  }
   0x9   :  { %s5151_s8 = sld [smem:[%s5751_s0 + %s5057_s4]]   ;;  %s5060_s20 = smov 11  }
   0xa   :  { %s5156_s14 = sld [smem:[%s5751_s0 + %s5058_s10]]   ;;  %s5061_s26 = smov 12  }
   0xb   :  { %s5161_s19 = sld [smem:[%s5751_s0 + %s5059_s15]]   ;;  %s5062_s1 = smov 13  }
   0xc   :  { %s5166_s24 = sld [smem:[%s5751_s0 + %s5060_s20]]   ;;  %s5063_s7 = smov 14  }
   0xd   :  { %s5171_s30 = sld [smem:[%s5751_s0 + %s5061_s26]]   ;;  %s5064_s15 = smov 15  }
   0xe   :  { %s5176_s6 = sld [smem:[%s5751_s0 + %s5062_s1]]   ;;  %s5065_s22 = smov 16  }
   0xf   :  { %s5181_s12 = sld [smem:[%s5751_s0 + %s5063_s7]]   ;;  %s5066_s28 = smov 17  }
  0x10   :  { %s5186_s20 = sld [smem:[%s5751_s0 + %s5064_s15]]   ;;  %s5067_s7 = smov 18  }
  0x11   :  { %s5191_s27 = sld [smem:[%s5751_s0 + %s5065_s22]]   ;;  %s5068_s15 = smov 19  }
  0x12   :  { %s5196_s4 = sld [smem:[%s5751_s0 + %s5066_s28]]   ;;  %s5069_s22 = smov 20  }
  0x13   :  { %s5070_s28 = smov 21  }
  0x14   :  { %5755 = sst [smem:[#allocation21_spill]] %s5176_s6 }
  0x15   :  { %5756 = sst [smem:[#allocation22_spill]] %s5181_s12 }
  0x16   :  { %s5201_s12 = sld [smem:[%s5751_s0 + %s5067_s7]]   ;;  %s5071_s7 = smov 22  }
  0x17   :  { %5757 = sst [smem:[#allocation23_spill]] %s5191_s27 }
  0x18   :  { %5758 = sst [smem:[#allocation24_spill]] %s5196_s4 }
  0x19   :  { %s5206_s6 = sld [smem:[%s5751_s0 + %s5068_s15]]   ;;  %s5072_s15 = smov 23  }
  0x1a   :  { %s5211_s27 = sld [smem:[%s5751_s0 + %s5069_s22]]   ;;  %s5073_s22 = smov 24  }
  0x1b   :  { %s5216_s4 = sld [smem:[%s5751_s0 + %s5070_s28]]   ;;  %s5074_s28 = smov 25  }
  0x1c   :  { %5759 = sst [smem:[#allocation25_spill]] %s5201_s12 }
  0x1d   :  { %s5221_s12 = sld [smem:[%s5751_s0 + %s5071_s7]]   ;;  %s5075_s7 = smov 26  }
  0x1f   :  { %5760 = sst [smem:[#allocation26_spill]] %s5206_s6 }
  0x20   :  { %5761 = sst [smem:[#allocation27_spill]] %s5211_s27 }
  0x21   :  { %5762 = sst [smem:[#allocation28_spill]] %s5216_s4 }
  0x22   :  { %s5226_s6 = sld [smem:[%s5751_s0 + %s5072_s15]]   ;;  %s5076_s15 = smov 27  }
  0x23   :  { %5763 = sst [smem:[#allocation29_spill]] %s5221_s12 }
  0x24   :  { %s5231_s27 = sld [smem:[%s5751_s0 + %s5073_s22]]   ;;  %s5077_s22 = smov 28  }
  0x25   :  { %s5236_s4 = sld [smem:[%s5751_s0 + %s5074_s28]]   ;;  %s5078_s28 = smov 29  }
  0x26   :  { %s5241_s12 = sld [smem:[%s5751_s0 + %s5075_s7]]  }
  0x28   :  { %5764 = sst [smem:[#allocation30_spill]] %s5226_s6 }
  0x29   :  { %s5246_s6 = sld [smem:[%s5751_s0 + %s5076_s15]]  }
  0x2a   :  { %5765 = sst [smem:[#allocation31_spill]] %s5231_s27 }
  0x2b   :  { %5766 = sst [smem:[#allocation32_spill]] %s5236_s4 }
  0x2c   :  { %s5251_s27 = sld [smem:[%s5751_s0 + %s5077_s22]]  }
  0x2d   :  { %s5256_s4 = sld [smem:[%s5751_s0 + %s5078_s28]]  }
  0x2e   :  { %64 = vsyncpa [#allocation5], 0 }
  0x2f   :  { %65 = vsyncpa [#allocation8], 0 }
  0x30   :  { %66 = vsyncpa [#allocation11], 0 }
  0x31   :  { %67 = vsyncpa [#allocation14], 0 }
  0x32   :  { %68 = vsyncpa [#allocation6], 0  ;;  %s5079_s7 = smov [#allocation7]   ;;  %s5080_s11 = smov [#allocation10]  }
  0x33   :  { %s97_s10 = sshll.u32 %s5079_s7, 4  ;;  %s121_s15 = sshll.u32 %s5080_s11, 4  ;;  %s98_s10 = int_to_ptr.vmem [resolvable:$true] %s97_s10  ;;  %s122_s15 = int_to_ptr.vmem [resolvable:$true] %s121_s15 }
  0x34   :  { %s4886_s16 = scalar_lea.hbm %s5141_s29, 16 }
  0x35   :  { %p4887_p0 = scmp.ne.s32.totalorder %s5141_s29, %s4886_s16  ;;  %p4890_p1 = scmp.lt.u32.totalorder %s4886_s16, %s5141_s29 }
  0x37   :  { %p4892_p2 = pnand %p4890_p1, %p4887_p0 }
  0x39   :  { %4895 = shalt.err (!%p4892_p2)
}
  0x3a   :  { %s4896_s0 = scalar_lea.vmem %s98_s10, 16  ;;  %s4900_s18 = scalar_lea.vmem %s98_s10, 32 }
  0x3b   :  { %p4897_p3 = scmp.ne.s32.totalorder %s98_s10, %s4896_s0  ;;  %p4901_p4 = scmp.lt.s32.totalorder %s98_s10, %s98_s10 }
  0x3c   :  { %p4902_p5 = scmp.lt.s32.totalorder %s4900_s18, %s4896_s0 }
  0x3e   :  { %p4903_p6 = por %p4902_p5, %p4901_p4 }
  0x40   :  { %p4904_p7 = pnand %p4903_p6, %p4897_p3 }
  0x42   :  { %4907 = shalt.err (!%p4904_p7)
}
  0x43   :  { %100 = dma.hbm_to_vmem [thread:$0]  %s5141_s29, 16, %s98_s10, [#allocation8]  }
  0x44   :  { %s4908_s22 = scalar_lea.hbm %s5161_s19, 16 }
  0x45   :  { %p4909_p8 = scmp.ne.s32.totalorder %s5161_s19, %s4908_s22  ;;  %p4912_p9 = scmp.lt.u32.totalorder %s4908_s22, %s5161_s19 }
  0x47   :  { %p4914_p10 = pnand %p4912_p9, %p4909_p8 }
  0x49   :  { %4917 = shalt.err (!%p4914_p10)
}
  0x4a   :  { %s4918_s23 = scalar_lea.vmem %s122_s15, 16  ;;  %s4922_s26 = scalar_lea.vmem %s122_s15, 32 }
  0x4b   :  { %p4919_p11 = scmp.ne.s32.totalorder %s122_s15, %s4918_s23  ;;  %p4923_p12 = scmp.lt.s32.totalorder %s122_s15, %s122_s15 }
  0x4c   :  { %p4924_p13 = scmp.lt.s32.totalorder %s4922_s26, %s4918_s23 }
  0x4e   :  { %p4925_p0 = por %p4924_p13, %p4923_p12 }
  0x50   :  { %p4926_p1 = pnand %p4925_p0, %p4919_p11 }
  0x52   :  { %4929 = shalt.err (!%p4926_p1)
}
  0x53   :  { %124 = dma.hbm_to_vmem [thread:$0]  %s5161_s19, 16, %s122_s15, [#allocation11]  }
  0x54   :  { %s5081_s28 = smov [#allocation4]   ;;  %s4930_s1 = scalar_lea.hbm %s5116_s9, 256 }
  0x55   :  { %s76_s29 = sshll.u32 %s5081_s28, 4  ;;  %p4931_p2 = scmp.ne.s32.totalorder %s5116_s9, %s4930_s1  ;;  %s77_s29 = int_to_ptr.vmem [resolvable:$true] %s76_s29 }
  0x56   :  { %p4934_p3 = scmp.lt.u32.totalorder %s4930_s1, %s5116_s9 }
  0x58   :  { %p4936_p4 = pnand %p4934_p3, %p4931_p2 }
  0x5a   :  { %4939 = shalt.err (!%p4936_p4)
}
  0x5b   :  { %s4940_s2 = scalar_lea.vmem %s77_s29, 256  ;;  %p4945_p6 = scmp.lt.s32.totalorder %s77_s29, %s77_s29 }
  0x5c   :  { %p4941_p5 = scmp.ne.s32.totalorder %s77_s29, %s4940_s2  ;;  %p4946_p7 = scmp.lt.s32.totalorder %s4940_s2, %s4940_s2 }
  0x5e   :  { %p4947_p8 = por %p4946_p7, %p4945_p6 }
  0x60   :  { %p4948_p9 = pnand %p4947_p8, %p4941_p5 }
  0x62   :  { %4951 = shalt.err (!%p4948_p9)
}
  0x63   :  { %s5082_s7 = smov 128   ;;  %s5083_s19 = smov 8  }
  0x64   :  { %82 = dma.hbm_to_vmem [thread:$0]  %s5116_s9, 256, %s77_s29, [#allocation5], %s5082_s7, %s5082_s7, %s5083_s19  }
  0x65   :  { %s5084_s10 = smov [#allocation9]   ;;  %s5085_s15 = smov [#allocation12]  }
  0x66   :  { %s109_s11 = sshll.u32 %s5084_s10, 4  ;;  %s133_s16 = sshll.u32 %s5085_s15, 4  ;;  %s110_s11 = int_to_ptr.vmem [resolvable:$true] %s109_s11  ;;  %s134_s16 = int_to_ptr.vmem [resolvable:$true] %s133_s16 }
  0x67   :  { %s4952_s0 = scalar_lea.hbm %s5151_s8, 16 }
  0x68   :  { %p4953_p10 = scmp.ne.s32.totalorder %s5151_s8, %s4952_s0  ;;  %p4956_p11 = scmp.lt.u32.totalorder %s4952_s0, %s5151_s8 }
  0x6a   :  { %p4958_p12 = pnand %p4956_p11, %p4953_p10 }
  0x6c   :  { %4961 = shalt.err (!%p4958_p12)
}
  0x6d   :  { %s4962_s18 = scalar_lea.vmem %s110_s11, 16  ;;  %s4966_s22 = scalar_lea.vmem %s110_s11, 32 }
  0x6e   :  { %p4963_p13 = scmp.ne.s32.totalorder %s110_s11, %s4962_s18  ;;  %p4967_p0 = scmp.lt.s32.totalorder %s110_s11, %s110_s11 }
  0x6f   :  { %p4968_p1 = scmp.lt.s32.totalorder %s4966_s22, %s4962_s18 }
  0x71   :  { %p4969_p2 = por %p4968_p1, %p4967_p0 }
  0x73   :  { %p4970_p3 = pnand %p4969_p2, %p4963_p13 }
  0x75   :  { %4973 = shalt.err (!%p4970_p3)
}
  0x76   :  { %112 = dma.hbm_to_vmem [thread:$0]  %s5151_s8, 16, %s110_s11, [#allocation8]  }
  0x77   :  { %s4974_s9 = scalar_lea.hbm %s5171_s30, 16 }
  0x78   :  { %p4975_p4 = scmp.ne.s32.totalorder %s5171_s30, %s4974_s9  ;;  %p4978_p5 = scmp.lt.u32.totalorder %s4974_s9, %s5171_s30 }
  0x7a   :  { %p4980_p6 = pnand %p4978_p5, %p4975_p4 }
  0x7c   :  { %4983 = shalt.err (!%p4980_p6)
}
  0x7d   :  { %s4984_s23 = scalar_lea.vmem %s134_s16, 16  ;;  %s4988_s26 = scalar_lea.vmem %s134_s16, 32 }
  0x7e   :  { %p4985_p7 = scmp.ne.s32.totalorder %s134_s16, %s4984_s23  ;;  %p4989_p8 = scmp.lt.s32.totalorder %s134_s16, %s134_s16 }
  0x7f   :  { %p4990_p9 = scmp.lt.s32.totalorder %s4988_s26, %s4984_s23 }
  0x81   :  { %p4991_p10 = por %p4990_p9, %p4989_p8 }
  0x83   :  { %p4992_p11 = pnand %p4991_p10, %p4985_p7 }
  0x85   :  { %4995 = shalt.err (!%p4992_p11)
}
  0x86   :  { %136 = dma.hbm_to_vmem [thread:$0]  %s5171_s30, 16, %s134_s16, [#allocation11]  }
  0x87   :  { %s5086_s8 = smov [#allocation13]   ;;  %s4996_s29 = scalar_lea.hbm %s5251_s27, 16 }
  0x88   :  { %s173_s28 = sshll.u32 %s5086_s8, 4  ;;  %p4997_p12 = scmp.ne.s32.totalorder %s5251_s27, %s4996_s29  ;;  %s174_s28 = int_to_ptr.vmem [resolvable:$true] %s173_s28 }
  0x89   :  { %p5000_p13 = scmp.lt.u32.totalorder %s4996_s29, %s5251_s27 }
  0x8b   :  { %p5002_p0 = pnand %p5000_p13, %p4997_p12 }
  0x8d   :  { %5005 = shalt.err (!%p5002_p0)
}
  0x8e   :  { %s5006_s1 = scalar_lea.vmem %s174_s28, 16  ;;  %s5010_s2 = scalar_lea.vmem %s174_s28, 32 }
  0x8f   :  { %p5007_p1 = scmp.ne.s32.totalorder %s174_s28, %s5006_s1  ;;  %p5011_p2 = scmp.lt.s32.totalorder %s174_s28, %s174_s28 }
  0x90   :  { %p5012_p3 = scmp.lt.s32.totalorder %s5010_s2, %s5006_s1 }
  0x92   :  { %p5013_p4 = por %p5012_p3, %p5011_p2 }
  0x94   :  { %p5014_p5 = pnand %p5013_p4, %p5007_p1 }
  0x96   :  { %5017 = shalt.err (!%p5014_p5)
}
  0x97   :  { %176 = dma.hbm_to_vmem [thread:$0]  %s5251_s27, 16, %s174_s28, [#allocation14]  }
  0x98   :  { %5040 = dma.done.wait [#allocation5], 256  }
  0x99   :  { %5041 = vsyncadd [#allocation5], 4294967040 }
  0x9a   :  { %5042 = dma.done.wait [#allocation8], 32  }
  0x9b   :  { %5043 = vsyncadd [#allocation8], 4294967264 }
  0x9c   :  { %5044 = dma.done.wait [#allocation11], 32  }
  0x9d   :  { %5045 = vsyncadd [#allocation11], 4294967264 }
  0x9e   :  { %5046 = dma.done.wait [#allocation14], 16  }
  0x9f   :  { %5047 = vsyncadd [#allocation14], 4294967280  ;;  %vm206_vm0 = vcmask 130048   ;;  %v197_v0 = vld [vmem:[#allocation4] sm:$0xff]  ;;  %v198_v1 = vld [vmem:[#allocation4 + $0x8] sm:$0xff]  ;;  %vm299_vm1 = vcmask 261120  }
  0xa0   :  { %v195_v2 = vld [vmem:[%s5111_s5] sm:$0xff]  ;;  %v4653_v3 = vpack.c.bf16 %v198_v1, %v197_v0  ;;  %v289_v5 = vld [vmem:[%s5126_s17 + $0x8] sm:$0xff]  ;;  %v290_v8 = vld [vmem:[%s5126_s17 + $0x10] sm:$0xff]  ;;  %v5087_v16 = vmov 0.0   ;;  %vm381_vm2 = vcmask 785408   ;;  %vm5088_vm3 = vmmov 0  }
  0xa1   :  { %4375 = vmatprep.mubr.msk.f32.mxu0 %vm206_vm0, %v195_v2  ;;  %v288_v4 = vld [vmem:[%s5126_s17] sm:$0xff]  ;;  %v196_v7 = vld [vmem:[%s5111_s5 + $0x8] sm:$0xff]  ;;  %v291_v9 = vld [vmem:[%s5126_s17 + $0x18] sm:$0xff]  ;;  %s5089_s5 = smov 120   ;;  %s5091_s17 = smov 80   ;;  %vm388_vm4 = vcmask 64512  }
  0xa2   :  { %v4657_v6 = vpack.c.bf16 %v289_v5, %v288_v4  ;;  %4654 = vmatprep.subr.bf16.mxu0 %v4653_v3  ;;  %v4661_v10 = vpack.c.bf16 %v291_v9, %v290_v8  ;;  %v4155_v11 = vld [vmem:[%s5121_s13] ss:$0 sm:$0xff]  ;;  %s5090_s13 = smov 96   ;;  %s5093_s30 = smov 72   ;;  %vm724_vm5 = vcmask 130112   ;;  %vm898_vm6 = vcmask 195712  }
  0xa3   :  { %4656 = vmatpush3.bf16.msra.mxu0 %v4653_v3  ;;  %v4158_v17 = vld [vmem:[%s5131_s21] ss:$0 sm:$0xff]  ;;  %s5092_s21 = smov 88   ;;  %s5094_s27 = smov 112   ;;  %vm1072_vm7 = vcmask 261312   ;;  %vm2026_vm8 = vcmask 523264  }
  0xa4   :  { %4658 = vmatprep.subr.bf16.mxu1 %v4657_v6  ;;  %4389 = vmatprep.subr.mxu0 %v5087_v16  ;;  %s5095_s10 = smov 104   ;;  %s5096_s11 = smov 56  }
  0xa5   :  { %4660 = vmatpush3.bf16.msra.mxu1 %v4657_v6  ;;  %s5097_s15 = smov 64   ;;  %s5098_s16 = smov 40  }
  0xa6   :  { %4376 = vmatmul.mubr.msk.f32.vlgmr.msra.gmra.mrb[0].mxu0 %vm206_vm0, %v196_v7  ;;  %4662 = vmatprep.subr.bf16.mxu1 %v4661_v10  ;;  %s5099_s0 = smov 48   ;;  %s5100_s18 = smov 16  }
  0xa7   :  { %4391 = vmatprep.mubr.msk.f32.mxu0 %vm5088_vm3, %v5087_v16  ;;  %s5101_s22 = smov 24   ;;  %s5772_s9 = sld [smem:[#allocation28_spill]] }
  0xa8   :  { %s5773_s23 = sld [smem:[#allocation26_spill]]  ;;  %s5774_s26 = sld [smem:[#allocation27_spill]] }
  0xa9   :  { %4664 = vmatpush3.bf16.msra.mxu1 %v4661_v10  ;;  %s5775_s8 = sld [smem:[#allocation30_spill]]  ;;  %s5776_s28 = sld [smem:[#allocation29_spill]] }
  0xaa   :  { %4399 = vmatprep.subr.mxu1 %v5087_v16  ;;  %s5777_s29 = sld [smem:[#allocation31_spill]]  ;;  %s5778_s1 = sld [smem:[#allocation32_spill]] }
 0x179   :  { %v4377_v12 = vpop.f32.mrb[0].mxu0 }
 0x17a   :  { %v279_v13 = vpop.f32.mrb[1].mxu0  ;;  %v5296_v15 = vadd.f32 %v4377_v12, %v4155_v11 }
 0x17b   :  { %v5294_v14 = vadd.f32 %v4155_v11, %v279_v13 }
 0x17d   :  { %4386 = vmatprep.mubr.msk.f32.mxu1 %vm299_vm1, %v5294_v14 }
 0x17e   :  { %4387 = vmatmul.mubr.msk.f32.vlgmr.msra.gmra.mrb[0].mxu1 %vm299_vm1, %v5296_v15 }
 0x17f   :  { %4401 = vmatprep.mubr.msk.f32.mxu1 %vm5088_vm3, %v5087_v16 }
 0x251   :  { %v4388_v18 = vpop.f32.mrb[0].mxu1 }
 0x252   :  { %v378_v19 = vadd.f32 %v4388_v18, %v4158_v17  ;;  %v372_v20 = vpop.f32.mrb[1].mxu1 }
 0x253   :  { %v373_v21 = vadd.f32 %v4158_v17, %v372_v20 }
 0x254   :  { %383 = vst.msk [vmem:[#allocation2 + $0x8] sm:$0xff] %vm381_vm2, %v378_v19 }
 0x255   :  { %382 = vst.msk [vmem:[#allocation2] sm:$0xff] %vm381_vm2, %v373_v21 }
 0x25b   :  { %v5325_v23 = vld [vmem:[#allocation2 + $0x8] sm:$0xff] }
 0x25c   :  { %v5311_v22 = vld [vmem:[#allocation2] sm:$0xff] }
 0x25d   :  { %554 = vrot.lane.b32.xlu1 %v5311_v22, %s5089_s5  ;;  %386 = vrot.lane.b32.xlu0 %v5311_v22, %s5090_s13 }
 0x261   :  { %730 = vrot.lane.b32.xlu1 %v5311_v22, %s5091_s17  ;;  %556 = vrot.lane.b32.xlu0 %v5311_v22, %s5092_s21 }
 0x265   :  { %904 = vrot.lane.b32.xlu1 %v5311_v22, %s5093_s30  ;;  %728 = vrot.lane.b32.xlu0 %v5311_v22, %s5094_s27 }
 0x269   :  { %1076 = vrot.lane.b32.xlu1 %v5325_v23, %s5090_s13  ;;  %902 = vrot.lane.b32.xlu0 %v5311_v22, %s5095_s10 }
 0x26d   :  { %1243 = vrot.lane.b32.xlu1 %v5325_v23, %s5089_s5  ;;  %1245 = vrot.lane.b32.xlu0 %v5325_v23, %s5092_s21 }
 0x271   :  { %1416 = vrot.lane.b32.xlu1 %v5325_v23, %s5094_s27  ;;  %1418 = vrot.lane.b32.xlu0 %v5325_v23, %s5091_s17 }
 0x275   :  { %1589 = vrot.lane.b32.xlu1 %v5325_v23, %s5095_s10  ;;  %1591 = vrot.lane.b32.xlu0 %v5325_v23, %s5093_s30 }
 0x279   :  { %644 = vrot.lane.b32.xlu1 %v5311_v22, %s5096_s11  ;;  %475 = vrot.lane.b32.xlu0 %v5311_v22, %s5097_s15 }
 0x2cf   :  { %v555_v24 = vpop.permute.xlu1 %554  ;;  %v387_v25 = vpop.permute.xlu0 %386 }
 0x2d0   :  { %4390 = vmatpush3.xpose.msk.msra.mxu0 %vm388_vm4, %v387_v25 }
 0x2d1   :  { %4394 = vmatprep.subr.mxu0 %v5087_v16 }
 0x2d3   :  { %v731_v26 = vpop.permute.xlu1 %730  ;;  %4392 = vmatmul.mubr.msk.f32.vlgmr.msra.gmra.mrb[2].mxu0 %vm388_vm4, %v5311_v22  ;;  %v557_v27 = vpop.permute.xlu0 %556 }
 0x2d4   :  { %4400 = vmatpush3.xpose.msk.msra.mxu1 %vm388_vm4, %v557_v27  ;;  %4396 = vmatprep.mubr.msk.f32.mxu0 %vm5088_vm3, %v5087_v16 }
 0x2d5   :  { %4409 = vmatprep.subr.mxu1 %v5087_v16 }
 0x2d7   :  { %v905_v28 = vpop.permute.xlu1 %904  ;;  %4402 = vmatmul.mubr.msk.f32.vlgmr.msra.gmra.mrb[2].mxu1 %vm388_vm4, %v555_v24  ;;  %v729_v29 = vpop.permute.xlu0 %728 }
 0x2d8   :  { %4410 = vmatpush3.xpose.msk.msra.mxu1 %vm388_vm4, %v731_v26  ;;  %4411 = vmatprep.mubr.msk.f32.mxu1 %vm5088_vm3, %v5087_v16 }
 0x2d9   :  { %4419 = vmatprep.subr.mxu1 %v5087_v16 }
 0x2db   :  { %4412 = vmatmul.mubr.msk.f32.vlgmr.msra.gmra.mrb[4].mxu1 %vm388_vm4, %v729_v29  ;;  %v903_v30 = vpop.permute.xlu0 %902  ;;  %v1077_v31 = vpop.permute.xlu1 %1076 }
 0x2dc   :  { %4420 = vmatpush3.xpose.msk.msra.mxu1 %vm388_vm4, %v905_v28  ;;  %4421 = vmatprep.mubr.msk.f32.mxu1 %vm5088_vm3, %v5087_v16 }
 0x2dd   :  { %4429 = vmatprep.subr.mxu1 %v5087_v16 }
 0x2df   :  { %4422 = vmatmul.mubr.msk.f32.vlgmr.msra.gmra.mrb[6].mxu1 %vm388_vm4, %v903_v30  ;;  %v1246_v32 = vpop.permute.xlu0 %1245  ;;  %v1244_v33 = vpop.permute.xlu1 %1243 }
 0x2e0   :  { %4430 = vmatpush3.xpose.msk.msra.mxu1 %vm388_vm4, %v1077_v31  ;;  %4431 = vmatprep.mubr.msk.f32.mxu1 %vm5088_vm3, %v5087_v16 }
 0x2e1   :  { %4439 = vmatprep.subr.mxu1 %v5087_v16 }
 0x2e3   :  { %4432 = vmatmul.mubr.msk.f32.vlgmr.msra.gmra.mrb[8].mxu1 %vm388_vm4, %v5325_v23  ;;  %v1419_v34 = vpop.permute.xlu0 %1418  ;;  %v1417_v36 = vpop.permute.xlu1 %1416 }
 0x2e4   :  { %4440 = vmatpush3.xpose.msk.msra.mxu1 %vm388_vm4, %v1246_v32  ;;  %4441 = vmatprep.mubr.msk.f32.mxu1 %vm5088_vm3, %v5087_v16 }
 0x2e5   :  { %4449 = vmatprep.subr.mxu1 %v5087_v16 }
 0x2e7   :  { %4442 = vmatmul.mubr.msk.f32.vlgmr.msra.gmra.mrb[10].mxu1 %vm388_vm4, %v1244_v33  ;;  %v1592_v35 = vpop.permute.xlu0 %1591  ;;  %v1590_v38 = vpop.permute.xlu1 %1589 }
 0x2e8   :  { %4450 = vmatpush3.xpose.msk.msra.mxu1 %vm388_vm4, %v1419_v34  ;;  %4451 = vmatprep.mubr.msk.f32.mxu1 %vm5088_vm3, %v5087_v16 }
 0x2e9   :  { %4459 = vmatprep.subr.mxu1 %v5087_v16 }
 0x2eb   :  { %4452 = vmatmul.mubr.msk.f32.vlgmr.msra.gmra.mrb[12].mxu1 %vm388_vm4, %v1417_v36  ;;  %v476_v37 = vpop.permute.xlu0 %475  ;;  %v5399_v7 = vpop.permute.xlu1 %644 }
 0x2ec   :  { %4395 = vmatpush3.msra.mxu0 %v476_v37  ;;  %4460 = vmatpush3.xpose.msk.msra.mxu1 %vm388_vm4, %v1592_v35 }
 0x2ed   :  { %4461 = vmatprep.mubr.msk.f32.mxu1 %vm5088_vm3, %v5087_v16  ;;  %4404 = vmatprep.subr.mxu0 %v5087_v16 }
 0x2ef   :  { %4462 = vmatmul.mubr.msk.f32.vlgmr.msra.gmra.mrb[14].mxu1 %vm388_vm4, %v1590_v38 }
 0x3a6   :  { %v459_v39 = vpop.f32.mrb[2].mxu0 }
 0x3a7   :  { %v463_v40 = vmul.f32 0.35355338, %v459_v39  ;;  %v4393_v41 = vpop.f32.mrb[3].mxu0 }
 0x3a9   :  { %v464_v42 = vsel %vm388_vm4, %v463_v40, -inf }
 0x3aa   :  { %465 = vmax.xlane.f32.xlu0 %v464_v42  ;;  %v628_v43 = vpop.f32.mrb[2].mxu1 }
 0x3ab   :  { %v632_v44 = vmul.f32 0.35355338, %v628_v43  ;;  %v4403_v45 = vpop.f32.mrb[3].mxu1 }
 0x3ad   :  { %v633_v46 = vsel %vm388_vm4, %v632_v44, -inf }
 0x3ae   :  { %634 = vmax.xlane.f32.xlu1 %v633_v46  ;;  %v802_v47 = vpop.f32.mrb[4].mxu1 }
 0x3af   :  { %v806_v48 = vmul.f32 0.35355338, %v802_v47  ;;  %v4413_v49 = vpop.f32.mrb[5].mxu1 }
 0x3b1   :  { %v807_v50 = vsel %vm388_vm4, %v806_v48, -inf }
 0x3b2   :  { %808 = vmax.xlane.f32.xlu0 %v807_v50  ;;  %v976_v51 = vpop.f32.mrb[6].mxu1 }
 0x3b3   :  { %v980_v52 = vmul.f32 0.35355338, %v976_v51  ;;  %v4423_v53 = vpop.f32.mrb[7].mxu1 }
 0x3b5   :  { %v981_v54 = vsel %vm388_vm4, %v980_v52, -inf }
 0x3b6   :  { %982 = vmax.xlane.f32.xlu0 %v981_v54  ;;  %v1148_v55 = vpop.f32.mrb[8].mxu1 }
 0x3b7   :  { %v1152_v56 = vmul.f32 0.35355338, %v1148_v55  ;;  %v4433_v57 = vpop.f32.mrb[9].mxu1 }
 0x3b9   :  { %v1153_v58 = vsel %vm388_vm4, %v1152_v56, -inf }
 0x3ba   :  { %1154 = vmax.xlane.f32.xlu1 %v1153_v58  ;;  %v1317_v59 = vpop.f32.mrb[10].mxu1 }
 0x3bb   :  { %v1321_v60 = vmul.f32 0.35355338, %v1317_v59  ;;  %v4443_v61 = vpop.f32.mrb[11].mxu1 }
 0x3bd   :  { %v1322_v62 = vsel %vm388_vm4, %v1321_v60, -inf }
 0x3be   :  { %1323 = vmax.xlane.f32.xlu0 %v1322_v62  ;;  %v1490_v63 = vpop.f32.mrb[12].mxu1 }
 0x3bf   :  { %v1494_v0 = vmul.f32 0.35355338, %v1490_v63  ;;  %v4453_v1 = vpop.f32.mrb[13].mxu1 }
 0x3c1   :  { %v1495_v2 = vsel %vm388_vm4, %v1494_v0, -inf }
 0x3c2   :  { %1496 = vmax.xlane.f32.xlu1 %v1495_v2  ;;  %v1663_v3 = vpop.f32.mrb[14].mxu1 }
 0x3c3   :  { %v1667_v4 = vmul.f32 0.35355338, %v1663_v3  ;;  %v4463_v5 = vpop.f32.mrb[15].mxu1 }
 0x3c5   :  { %v1668_v6 = vsel %vm388_vm4, %v1667_v4, -inf }
 0x3c6   :  { %1669 = vmax.xlane.f32.xlu0 %v1668_v6 }
 0x3d3   :  { %992 = vrot.lane.b32.xlu1 %v5311_v22, %s5098_s16 }
 0x3dc   :  { %818 = vrot.lane.b32.xlu0 %v5311_v22, %s5099_s0 }
 0x437   :  { %v466_v8 = vpop.xlane.xlu0 %465 }
 0x438   :  { %v467_v9 = vsub.f32 %v463_v40, %v466_v8 }
 0x43a   :  { %v468_v10 = vmul.f32 1.442695, %v467_v9 }
 0x43b   :  { %v635_v11 = vpop.xlane.xlu1 %634 }
 0x43c   :  { %4798 = vpow2.f32 %v468_v10  ;;  %v636_v12 = vsub.f32 %v632_v44, %v635_v11 }
 0x43e   :  { %v637_v13 = vmul.f32 1.442695, %v636_v12 }
 0x43f   :  { %v809_v17 = vpop.xlane.xlu0 %808 }
 0x440   :  { %4800 = vpow2.f32 %v637_v13  ;;  %v810_v18 = vsub.f32 %v806_v48, %v809_v17 }
 0x442   :  { %v811_v19 = vmul.f32 1.442695, %v810_v18 }
 0x443   :  { %v983_v20 = vpop.xlane.xlu0 %982 }
 0x444   :  { %4802 = vpow2.f32 %v811_v19  ;;  %v984_v21 = vsub.f32 %v980_v52, %v983_v20 }
 0x446   :  { %v4799_v24 = vpop.eup %4798  ;;  %v985_v25 = vmul.f32 1.442695, %v984_v21 }
 0x447   :  { %v470_v22 = vsel %vm388_vm4, %v4799_v24, 0.0  ;;  %v1155_v32 = vpop.xlane.xlu1 %1154 }
 0x448   :  { %4804 = vpow2.f32 %v985_v25  ;;  %471 = vadd.xlane.f32.xlu1 %v470_v22  ;;  %v1156_v33 = vsub.f32 %v1152_v56, %v1155_v32 }
 0x44a   :  { %v4801_v26 = vpop.eup %4800  ;;  %v1157_v37 = vmul.f32 1.442695, %v1156_v33 }
 0x44b   :  { %v639_v27 = vsel %vm388_vm4, %v4801_v26, 0.0  ;;  %v1324_v34 = vpop.xlane.xlu0 %1323 }
 0x44c   :  { %640 = vadd.xlane.f32.xlu0 %v639_v27  ;;  %v1325_v36 = vsub.f32 %v1321_v60, %v1324_v34  ;;  %4806 = vpow2.f32 %v1157_v37  ;;  %v1764_v34 = vld [vmem:[%s5136_s25 + $0x10] sm:$0xff] }
 0x44e   :  { %v4803_v28 = vpop.eup %4802  ;;  %v1326_v40 = vmul.f32 1.442695, %v1325_v36 }
 0x44f   :  { %v813_v29 = vsel %vm388_vm4, %v4803_v28, 0.0  ;;  %v1497_v35 = vpop.xlane.xlu1 %1496 }
 0x450   :  { %814 = vadd.xlane.f32.xlu1 %v813_v29  ;;  %v1498_v38 = vsub.f32 %v1494_v0, %v1497_v35  ;;  %4808 = vpow2.f32 %v1326_v40  ;;  %v1762_v29 = vld [vmem:[%s5136_s25] sm:$0xff]  ;;  %v1765_v35 = vld [vmem:[%s5136_s25 + $0x18] sm:$0xff] }
 0x451   :  { %v4669_v36 = vpack.c.bf16 %v1765_v35, %v1764_v34  ;;  %v2015_v35 = vld [vmem:[%s5166_s24 + $0x20] sm:$0xff] }
 0x452   :  { %v5404_v30 = vpop.eup %4804  ;;  %v1499_v41 = vmul.f32 1.442695, %v1498_v38 }
 0x453   :  { %v987_v31 = vsel %vm388_vm4, %v5404_v30, 0.0  ;;  %v1670_v39 = vpop.xlane.xlu0 %1669  ;;  %v993_v52 = vpop.permute.xlu1 %992 }
 0x454   :  { %988 = vadd.xlane.f32.xlu0 %v987_v31  ;;  %v1671_v42 = vsub.f32 %v1667_v4, %v1670_v39  ;;  %4810 = vpow2.f32 %v1499_v41 }
 0x456   :  { %v1672_v43 = vmul.f32 1.442695, %v1671_v42  ;;  %v4807_v44 = vpop.eup %4806 }
 0x457   :  { %v1159_v46 = vsel %vm388_vm4, %v4807_v44, 0.0  ;;  %v819_v53 = vpop.permute.xlu0 %818 }
 0x458   :  { %4812 = vpow2.f32 %v1672_v43 }
 0x45a   :  { %v5412_v45 = vpop.eup %4808 }
 0x45b   :  { %v1328_v49 = vsel %vm388_vm4, %v5412_v45, 0.0 }
 0x45e   :  { %v5415_v47 = vpop.eup %4810 }
 0x45f   :  { %v1501_v48 = vsel %vm388_vm4, %v5415_v47, 0.0 }
 0x461   :  { %1333 = vrot.lane.b32.xlu1 %v5325_v23, %s5096_s11 }
 0x462   :  { %v5421_v50 = vpop.eup %4812 }
 0x463   :  { %v1674_v51 = vsel %vm388_vm4, %v5421_v50, 0.0 }
 0x46a   :  { %1164 = vrot.lane.b32.xlu0 %v5325_v23, %s5097_s15 }
 0x485   :  { %1160 = vadd.xlane.f32.xlu1 %v1159_v46 }
 0x489   :  { %1502 = vadd.xlane.f32.xlu1 %v1501_v48  ;;  %1329 = vadd.xlane.f32.xlu0 %v1328_v49 }
 0x48d   :  { %1675 = vadd.xlane.f32.xlu1 %v1674_v51  ;;  %v4185_v51 = vld [vmem:[#allocation7] ss:$0 sm:$0xff] }
 0x49e   :  { %1679 = vrot.lane.b32.xlu1 %v5325_v23, %s5098_s16 }
 0x49f   :  { %1506 = vrot.lane.b32.xlu0 %v5325_v23, %s5099_s0 }
 0x4d5   :  { %v472_v54 = vpop.xlane.xlu1 %471 }
 0x4d6   :  { %4814 = vrcp.f32 %v472_v54 }
 0x4d9   :  { %v641_v55 = vpop.xlane.xlu0 %640 }
 0x4da   :  { %4816 = vrcp.f32 %v641_v55 }
 0x4dd   :  { %v815_v56 = vpop.xlane.xlu1 %814 }
 0x4de   :  { %4818 = vrcp.f32 %v815_v56 }
 0x4e0   :  { %v4815_v57 = vpop.eup %4814 }
 0x4e1   :  { %v474_v58 = vmul.f32 %v4815_v57, %v4799_v24  ;;  %v989_v59 = vpop.xlane.xlu0 %988  ;;  %v1334_v2 = vpop.permute.xlu1 %1333 }
 0x4e2   :  { %4820 = vrcp.f32 %v989_v59 }
 0x4e3   :  { %4397 = vmatmul.mubr.msk.f32.vlgmr.msra.gmra.mrb[4].mxu0 %vm388_vm4, %v474_v58 }
 0x4e4   :  { %v4817_v60 = vpop.eup %4816  ;;  %4405 = vmatpush3.msra.mxu0 %v5399_v7  ;;  %4406 = vmatprep.mubr.msk.f32.mxu0 %vm5088_vm3, %v5087_v16 }
 0x4e5   :  { %v643_v23 = vmul.f32 %v4817_v60, %v4801_v26  ;;  %4414 = vmatprep.subr.mxu0 %v5087_v16  ;;  %v1165_v1 = vpop.permute.xlu0 %1164 }
 0x4e7   :  { %4407 = vmatmul.mubr.msk.f32.vlgmr.msra.gmra.mrb[6].mxu0 %vm388_vm4, %v643_v23 }
 0x4e8   :  { %v4819_v61 = vpop.eup %4818  ;;  %4415 = vmatpush3.msra.mxu0 %v819_v53  ;;  %4416 = vmatprep.mubr.msk.f32.mxu0 %vm5088_vm3, %v5087_v16 }
 0x4e9   :  { %v817_v62 = vmul.f32 %v4819_v61, %v4803_v28  ;;  %4424 = vmatprep.subr.mxu0 %v5087_v16 }
 0x4eb   :  { %4417 = vmatmul.mubr.msk.f32.vlgmr.msra.gmra.mrb[8].mxu0 %vm388_vm4, %v817_v62 }
 0x4ec   :  { %v4821_v63 = vpop.eup %4820  ;;  %4425 = vmatpush3.msra.mxu0 %v993_v52  ;;  %4426 = vmatprep.mubr.msk.f32.mxu0 %vm5088_vm3, %v5087_v16 }
 0x4ed   :  { %v991_v0 = vmul.f32 %v4821_v63, %v5404_v30  ;;  %4434 = vmatprep.subr.mxu0 %v5087_v16  ;;  %v1763_v30 = vld [vmem:[%s5136_s25 + $0x8] sm:$0xff]  ;;  %s5767_s25 = sld [smem:[#allocation21_spill]] }
 0x4ee   :  { %v4665_v32 = vpack.c.bf16 %v1763_v30, %v1762_v29  ;;  %v2011_v29 = vld [vmem:[%s5166_s24] sm:$0xff]  ;;  %v2012_v30 = vld [vmem:[%s5166_s24 + $0x8] sm:$0xff] }
 0x4ef   :  { %4427 = vmatmul.mubr.msk.f32.vlgmr.msra.gmra.mrb[10].mxu0 %vm388_vm4, %v991_v0 }
 0x4f0   :  { %4435 = vmatpush3.msra.mxu0 %v1165_v1  ;;  %4436 = vmatprep.mubr.msk.f32.mxu0 %vm5088_vm3, %v5087_v16 }
 0x4f1   :  { %4444 = vmatprep.subr.mxu0 %v5087_v16  ;;  %4666 = vmatprep.subr.bf16.mxu1 %v4665_v32 }
 0x4f2   :  { %4668 = vmatpush3.bf16.msra.mxu1 %v4665_v32  ;;  %v2013_v32 = vld [vmem:[%s5166_s24 + $0x10] sm:$0xff] }
 0x4f3   :  { %4670 = vmatprep.subr.bf16.mxu1 %v4669_v36 }
 0x4f6   :  { %4672 = vmatpush3.bf16.msra.mxu1 %v4669_v36  ;;  %v2016_v36 = vld [vmem:[%s5166_s24 + $0x28] sm:$0xff] }
 0x512   :  { %v1161_v3 = vpop.xlane.xlu1 %1160 }
 0x513   :  { %4822 = vrcp.f32 %v1161_v3  ;;  %v1901_v3 = vld [vmem:[%s5156_s14] sm:$0xff] }
 0x516   :  { %v1503_v4 = vpop.xlane.xlu1 %1502  ;;  %v1330_v5 = vpop.xlane.xlu0 %1329 }
 0x517   :  { %4824 = vrcp.f32 %v1330_v5 }
 0x518   :  { %4826 = vrcp.f32 %v1503_v4  ;;  %v1902_v4 = vld [vmem:[%s5156_s14 + $0x8] sm:$0xff] }
 0x519   :  { %v4673_v5 = vpack.c.bf16 %v1902_v4, %v1901_v3 }
 0x51a   :  { %v1676_v6 = vpop.xlane.xlu1 %1675  ;;  %v1507_v12 = vpop.permute.xlu0 %1506 }
 0x51b   :  { %4828 = vrcp.f32 %v1676_v6  ;;  %v1903_v6 = vld [vmem:[%s5156_s14 + $0x10] sm:$0xff] }
 0x51d   :  { %v4823_v7 = vpop.eup %4822 }
 0x51e   :  { %v1163_v8 = vmul.f32 %v4823_v7, %v4807_v44  ;;  %v1680_v18 = vpop.permute.xlu1 %1679  ;;  %v1904_v7 = vld [vmem:[%s5156_s14 + $0x18] sm:$0xff]  ;;  %s5769_s14 = sld [smem:[#allocation23_spill]] }
 0x520   :  { %4437 = vmatmul.mubr.msk.f32.vlgmr.msra.gmra.mrb[12].mxu0 %vm388_vm4, %v1163_v8  ;;  %v4677_v8 = vpack.c.bf16 %v1904_v7, %v1903_v6 }
 0x521   :  { %4445 = vmatpush3.msra.mxu0 %v1334_v2  ;;  %4446 = vmatprep.mubr.msk.f32.mxu0 %vm5088_vm3, %v5087_v16  ;;  %v4825_v9 = vpop.eup %4824 }
 0x522   :  { %4454 = vmatprep.subr.mxu0 %v5087_v16  ;;  %v1332_v10 = vmul.f32 %v4825_v9, %v5412_v45  ;;  %v4827_v11 = vpop.eup %4826 }
 0x523   :  { %v1505_v13 = vmul.f32 %v4827_v11, %v5415_v47 }
 0x524   :  { %4447 = vmatmul.mubr.msk.f32.vlgmr.msra.gmra.mrb[14].mxu0 %vm388_vm4, %v1332_v10 }
 0x525   :  { %4455 = vmatpush3.msra.mxu0 %v1507_v12  ;;  %4456 = vmatprep.mubr.msk.f32.mxu0 %vm5088_vm3, %v5087_v16  ;;  %v4829_v17 = vpop.eup %4828 }
 0x526   :  { %4464 = vmatprep.subr.mxu0 %v5087_v16  ;;  %v1678_v19 = vmul.f32 %v4829_v17, %v5421_v50 }
 0x528   :  { %4457 = vmatmul.mubr.msk.f32.vlgmr.msra.gmra.mrb[16].mxu0 %vm388_vm4, %v1505_v13 }
 0x529   :  { %4465 = vmatpush3.msra.mxu0 %v1680_v18  ;;  %4466 = vmatprep.mubr.msk.f32.mxu0 %vm5088_vm3, %v5087_v16 }
 0x52a   :  { %4674 = vmatprep.subr.bf16.mxu0 %v4673_v5 }
 0x52c   :  { %4467 = vmatmul.mubr.msk.f32.vlgmr.msra.gmra.mrb[18].mxu0 %vm388_vm4, %v1678_v19  ;;  %v4188_v19 = vld [vmem:[%s5146_s3] ss:$0 sm:$0xff]  ;;  %s5768_s3 = sld [smem:[#allocation22_spill]] }
 0x52d   :  { %4676 = vmatpush3.bf16.msra.mxu0 %v4673_v5 }
 0x52e   :  { %4678 = vmatprep.subr.bf16.mxu0 %v4677_v8 }
 0x531   :  { %4680 = vmatpush3.bf16.msra.mxu0 %v4677_v8 }
 0x5b6   :  { %v547_v20 = vpop.f32.mrb[4].mxu0 }
 0x5b7   :  { %551 = vst.msk [vmem:[#allocation3] sm:$0xff] %vm388_vm4, %v547_v20  ;;  %v4398_v21 = vpop.f32.mrb[5].mxu0 }
 0x5b8   :  { %v4189_v21 = vld [vmem:[#allocation9] ss:$0 sm:$0xff] }
 0x5ba   :  { %v716_v24 = vpop.f32.mrb[6].mxu0 }
 0x5bb   :  { %721 = vrot.lane.b32.xlu0 %v716_v24, %s5083_s19  ;;  %v4408_v25 = vpop.f32.mrb[7].mxu0 }
 0x5be   :  { %v890_v22 = vpop.f32.mrb[8].mxu0 }
 0x5bf   :  { %895 = vrot.lane.b32.xlu1 %v890_v22, %s5100_s18  ;;  %v4418_v26 = vpop.f32.mrb[9].mxu0 }
 0x5c2   :  { %v1064_v27 = vpop.f32.mrb[10].mxu0 }
 0x5c3   :  { %1069 = vrot.lane.b32.xlu1 %v1064_v27, %s5101_s22  ;;  %v4428_v28 = vpop.f32.mrb[11].mxu0 }
 0x5f3   :  { %v1236_v31 = vpop.f32.mrb[12].mxu0 }
 0x5f4   :  { %1240 = vst.msk [vmem:[#allocation3 + $0x8] sm:$0xff] %vm388_vm4, %v1236_v31  ;;  %v4438_v33 = vpop.f32.mrb[13].mxu0  ;;  %v4681_v31 = vpack.c.bf16 %v2012_v30, %v2011_v29 }
 0x5f5   :  { %v2014_v33 = vld [vmem:[%s5166_s24 + $0x18] sm:$0xff] }
 0x5f6   :  { %v4685_v34 = vpack.c.bf16 %v2014_v33, %v2013_v32  ;;  %4682 = vmatprep.subr.bf16.mxu1 %v4681_v31  ;;  %v4196_v33 = vld [vmem:[%s5767_s25] ss:$0 sm:$0xff] }
 0x5f7   :  { %v1405_v37 = vpop.f32.mrb[14].mxu0 }
 0x5f8   :  { %1410 = vrot.lane.b32.xlu0 %v1405_v37, %s5083_s19  ;;  %v4448_v38 = vpop.f32.mrb[15].mxu0  ;;  %v4689_v37 = vpack.c.bf16 %v2016_v36, %v2015_v35 }
 0x5f9   :  { %v2017_v38 = vld [vmem:[%s5166_s24 + $0x30] sm:$0xff] }
 0x5fb   :  { %v1578_v39 = vpop.f32.mrb[16].mxu0 }
 0x5fc   :  { %1583 = vrot.lane.b32.xlu0 %v1578_v39, %s5100_s18  ;;  %v4458_v40 = vpop.f32.mrb[17].mxu0  ;;  %v2018_v39 = vld [vmem:[%s5166_s24 + $0x38] sm:$0xff]  ;;  %s5770_s24 = sld [smem:[#allocation24_spill]] }
 0x5fd   :  { %v4693_v40 = vpack.c.bf16 %v2018_v39, %v2017_v38 }
 0x5ff   :  { %v1751_v41 = vpop.f32.mrb[18].mxu0 }
 0x600   :  { %1756 = vrot.lane.b32.xlu1 %v1751_v41, %s5101_s22  ;;  %v4468_v42 = vpop.f32.mrb[19].mxu0  ;;  %v4190_v41 = vld [vmem:[#allocation10] ss:$0 sm:$0xff] }
 0x62d   :  { %v722_v43 = vpop.permute.xlu0 %721 }
 0x62e   :  { %725 = vst.msk [vmem:[#allocation3] sm:$0xff] %vm724_vm5, %v722_v43 }
 0x631   :  { %v896_v44 = vpop.permute.xlu1 %895 }
 0x632   :  { %899 = vst.msk [vmem:[#allocation3] sm:$0xff] %vm898_vm6, %v896_v44 }
 0x635   :  { %v1070_v45 = vpop.permute.xlu1 %1069 }
 0x636   :  { %1073 = vst.msk [vmem:[#allocation3] sm:$0xff] %vm1072_vm7, %v1070_v45 }
 0x63d   :  { %v1760_v46 = vld [vmem:[#allocation3] sm:$0xff] }
 0x63e   :  { %4477 = vmatprep.mubr.msk.f32.mxu1 %vm299_vm1, %v1760_v46 }
 0x66a   :  { %v1411_v47 = vpop.permute.xlu0 %1410 }
 0x66b   :  { %1413 = vst.msk [vmem:[#allocation3 + $0x8] sm:$0xff] %vm724_vm5, %v1411_v47 }
 0x66e   :  { %v1584_v48 = vpop.permute.xlu0 %1583 }
 0x66f   :  { %1586 = vst.msk [vmem:[#allocation3 + $0x8] sm:$0xff] %vm898_vm6, %v1584_v48 }
 0x672   :  { %v1757_v49 = vpop.permute.xlu1 %1756 }
 0x673   :  { %1759 = vst.msk [vmem:[#allocation3 + $0x8] sm:$0xff] %vm1072_vm7, %v1757_v49 }
 0x67a   :  { %v1761_v50 = vld [vmem:[#allocation3 + $0x8] sm:$0xff] }
 0x67b   :  { %4478 = vmatmul.mubr.msk.f32.vlgmr.msra.gmra.mrb[16].mxu1 %vm299_vm1, %v1761_v50 }
 0x67c   :  { %4684 = vmatpush3.bf16.msra.mxu1 %v4681_v31 }
 0x67d   :  { %4686 = vmatprep.subr.bf16.mxu1 %v4685_v34 }
 0x680   :  { %4688 = vmatpush3.bf16.msra.mxu1 %v4685_v34 }
 0x681   :  { %4690 = vmatprep.subr.bf16.mxu1 %v4689_v37 }
 0x684   :  { %4692 = vmatpush3.bf16.msra.mxu1 %v4689_v37  ;;  %v4197_v37 = vld [vmem:[%s5768_s3] ss:$0 sm:$0xff] }
 0x685   :  { %4694 = vmatprep.subr.bf16.mxu1 %v4693_v40 }
 0x688   :  { %4696 = vmatpush3.bf16.msra.mxu1 %v4693_v40 }
 0x689   :  { %4531 = vmatprep.subr.mxu1 %v5087_v16 }
 0x74e   :  { %v4479_v52 = vpop.f32.mrb[16].mxu1 }
 0x74f   :  { %v1851_v53 = vadd.f32 %v4479_v52, %v4185_v51  ;;  %v1845_v54 = vpop.f32.mrb[17].mxu1 }
 0x750   :  { %v1846_v55 = vadd.f32 %v4185_v51, %v1845_v54 }
 0x751   :  { %v1855_v56 = vadd.f32 %v1851_v53, %v5296_v15 }
 0x752   :  { %v1854_v57 = vadd.f32 %v1846_v55, %v5294_v14 }
 0x753   :  { %v1861_v58 = vsel %vm299_vm1, %v1855_v56, 0.0 }
 0x754   :  { %1862 = vadd.xlane.f32.xlu1 %v1861_v58  ;;  %v1858_v59 = vsel %vm299_vm1, %v1854_v57, 0.0 }
 0x755   :  { %1859 = vadd.xlane.f32.xlu0 %v1858_v59 }
 0x7e1   :  { %v1863_v60 = vpop.xlane.xlu1 %1862 }
 0x7e2   :  { %v1866_v23 = vmul.f32 0.03125, %v1863_v60  ;;  %v1860_v61 = vpop.xlane.xlu0 %1859 }
 0x7e3   :  { %v1865_v62 = vmul.f32 0.03125, %v1860_v61 }
 0x7e4   :  { %v1868_v63 = vsub.f32 %v1855_v56, %v1866_v23 }
 0x7e5   :  { %v1867_v0 = vsub.f32 %v1854_v57, %v1865_v62 }
 0x7e6   :  { %v1870_v14 = vmul.f32 %v1868_v63, %v1868_v63 }
 0x7e7   :  { %v1869_v1 = vmul.f32 %v1867_v0, %v1867_v0 }
 0x7e8   :  { %v1874_v2 = vsel %vm299_vm1, %v1870_v14, 0.0 }
 0x7e9   :  { %v1871_v15 = vsel %vm299_vm1, %v1869_v1, 0.0 }
 0x7ea   :  { %1872 = vadd.xlane.f32.xlu0 %v1871_v15 }
 0x7ee   :  { %1875 = vadd.xlane.f32.xlu0 %v1874_v2 }
 0x877   :  { %v1873_v9 = vpop.xlane.xlu0 %1872 }
 0x878   :  { %v1877_v10 = vmul.f32 0.03125, %v1873_v9 }
 0x87a   :  { %v1879_v11 = vadd.f32 1e-12, %v1877_v10 }
 0x87b   :  { %v1876_v12 = vpop.xlane.xlu0 %1875 }
 0x87c   :  { %4830 = vrsqrt.f32 %v1879_v11  ;;  %v1878_v13 = vmul.f32 0.03125, %v1876_v12 }
 0x87e   :  { %v1880_v17 = vadd.f32 1e-12, %v1878_v13 }
 0x880   :  { %4832 = vrsqrt.f32 %v1880_v17 }
 0x886   :  { %v4831_v18 = vpop.eup %4830 }
 0x887   :  { %v1883_v20 = vmul.f32 %v4831_v18, %v1867_v0 }
 0x889   :  { %v1891_v24 = vmul.f32 %v4188_v19, %v1883_v20  ;;  %v2155_v20 = vld [vmem:[%s5186_s20 + $0x8] sm:$0xff] }
 0x88a   :  { %v4833_v25 = vpop.eup %4832 }
 0x88b   :  { %v1884_v22 = vmul.f32 %v4833_v25, %v1868_v63  ;;  %v1899_v26 = vadd.f32 %v4189_v21, %v1891_v24  ;;  %v4193_v63 = vld [vmem:[#allocation12] ss:$0 sm:$0xff]  ;;  %v2157_v25 = vld [vmem:[%s5186_s20 + $0x18] sm:$0xff] }
 0x88c   :  { %v2156_v24 = vld [vmem:[%s5186_s20 + $0x10] sm:$0xff] }
 0x88d   :  { %v1892_v27 = vmul.f32 %v4188_v19, %v1884_v22  ;;  %4488 = vmatprep.mubr.msk.f32.mxu0 %vm299_vm1, %v1899_v26  ;;  %v2154_v19 = vld [vmem:[%s5186_s20] sm:$0xff]  ;;  %v4701_v22 = vpack.c.bf16 %v2157_v25, %v2156_v24  ;;  %s5771_s20 = sld [smem:[#allocation25_spill]] }
 0x88f   :  { %v1900_v28 = vadd.f32 %v4189_v21, %v1892_v27  ;;  %v4697_v21 = vpack.c.bf16 %v2155_v20, %v2154_v19 }
 0x891   :  { %4489 = vmatmul.mubr.msk.f32.vlgmr.msra.gmra.mrb[20].mxu0 %vm299_vm1, %v1900_v28  ;;  %4698 = vmatprep.subr.bf16.mxu0 %v4697_v21 }
 0x892   :  { %4700 = vmatpush3.bf16.msra.mxu0 %v4697_v21 }
 0x893   :  { %4702 = vmatprep.subr.bf16.mxu0 %v4701_v22 }
 0x896   :  { %4704 = vmatpush3.bf16.msra.mxu0 %v4701_v22 }
 0x897   :  { %4521 = vmatprep.subr.mxu0 %v5087_v16 }
 0x964   :  { %v4490_v42 = vpop.f32.mrb[20].mxu0 }
 0x965   :  { %v1990_v43 = vadd.f32 %v4490_v42, %v4190_v41  ;;  %v1984_v44 = vpop.f32.mrb[21].mxu0  ;;  %v4198_v42 = vld [vmem:[%s5769_s14] ss:$0 sm:$0xff] }
 0x966   :  { %v1985_v45 = vadd.f32 %v4190_v41, %v1984_v44 }
 0x967   :  { %v1996_v46 = vmul.f32 0.044715, %v1990_v43  ;;  %v1994_v23 = vmul.f32 0.5, %v1990_v43 }
 0x968   :  { %v1995_v47 = vmul.f32 0.044715, %v1985_v45  ;;  %v1993_v59 = vmul.f32 0.5, %v1985_v45 }
 0x969   :  { %v1998_v48 = vmul.f32 %v1996_v46, %v1990_v43 }
 0x96a   :  { %v1997_v49 = vmul.f32 %v1995_v47, %v1985_v45 }
 0x96b   :  { %v2000_v50 = vmul.f32 %v1998_v48, %v1990_v43 }
 0x96c   :  { %v1999_v51 = vmul.f32 %v1997_v49, %v1985_v45 }
 0x96d   :  { %v2002_v52 = vadd.f32 %v2000_v50, %v1990_v43 }
 0x96e   :  { %v2001_v53 = vadd.f32 %v1999_v51, %v1985_v45 }
 0x96f   :  { %v2004_v54 = vmul.f32 0.7978846, %v2002_v52 }
 0x970   :  { %v2003_v55 = vmul.f32 0.7978846, %v2001_v53 }
 0x971   :  { %4834 = vtanh.f32 %v2004_v54 }
 0x972   :  { %4836 = vtanh.f32 %v2003_v55 }
 0x97b   :  { %v4835_v56 = vpop.eup %4834 }
 0x97c   :  { %v4837_v57 = vpop.eup %4836  ;;  %v2008_v58 = vadd.f32 1.0, %v4835_v56 }
 0x97d   :  { %v2007_v60 = vadd.f32 1.0, %v4837_v57 }
 0x97e   :  { %v2010_v62 = vmul.f32 %v2008_v58, %v1994_v23 }
 0x97f   :  { %v2009_v61 = vmul.f32 %v2007_v60, %v1993_v59 }
 0x981   :  { %4507 = vmatprep.mubr.msk.f32.mxu1 %vm2026_vm8, %v2009_v61 }
 0x982   :  { %4508 = vmatmul.mubr.msk.f32.vlgmr.msra.gmra.mrb[18].mxu1 %vm2026_vm8, %v2010_v62 }
 0x983   :  { %4533 = vmatprep.mubr.msk.f32.mxu1 %vm5088_vm3, %v5087_v16 }
 0xa55   :  { %v4509_v0 = vpop.f32.mrb[18].mxu1 }
 0xa56   :  { %v2105_v1 = vadd.f32 %v4509_v0, %v4193_v63  ;;  %v2099_v15 = vpop.f32.mrb[19].mxu1 }
 0xa57   :  { %v2100_v14 = vadd.f32 %v4193_v63, %v2099_v15 }
 0xa58   :  { %v2109_v2 = vadd.f32 %v2105_v1, %v1900_v28 }
 0xa59   :  { %v2108_v3 = vadd.f32 %v2100_v14, %v1899_v26 }
 0xa5a   :  { %v2115_v4 = vsel %vm299_vm1, %v2109_v2, 0.0 }
 0xa5b   :  { %2116 = vadd.xlane.f32.xlu0 %v2115_v4  ;;  %v2112_v5 = vsel %vm299_vm1, %v2108_v3, 0.0 }
 0xa5c   :  { %2113 = vadd.xlane.f32.xlu1 %v2112_v5 }
 0xae8   :  { %v2117_v6 = vpop.xlane.xlu0 %2116 }
 0xae9   :  { %v2119_v7 = vmul.f32 0.03125, %v2117_v6  ;;  %v2114_v8 = vpop.xlane.xlu1 %2113 }
 0xaea   :  { %v2118_v9 = vmul.f32 0.03125, %v2114_v8 }
 0xaeb   :  { %v2121_v10 = vsub.f32 %v2109_v2, %v2119_v7 }
 0xaec   :  { %v2120_v11 = vsub.f32 %v2108_v3, %v2118_v9 }
 0xaed   :  { %v2123_v12 = vmul.f32 %v2121_v10, %v2121_v10 }
 0xaee   :  { %v2122_v13 = vmul.f32 %v2120_v11, %v2120_v11 }
 0xaef   :  { %v2127_v17 = vsel %vm299_vm1, %v2123_v12, 0.0 }
 0xaf0   :  { %2128 = vadd.xlane.f32.xlu0 %v2127_v17  ;;  %v2124_v18 = vsel %vm299_vm1, %v2122_v13, 0.0 }
 0xaf1   :  { %2125 = vadd.xlane.f32.xlu1 %v2124_v18 }
 0xb7d   :  { %v2129_v26 = vpop.xlane.xlu0 %2128 }
 0xb7e   :  { %v2131_v27 = vmul.f32 0.03125, %v2129_v26  ;;  %v2126_v28 = vpop.xlane.xlu1 %2125 }
 0xb7f   :  { %v2130_v29 = vmul.f32 0.03125, %v2126_v28 }
 0xb80   :  { %v2133_v30 = vadd.f32 1e-12, %v2131_v27 }
 0xb81   :  { %v2132_v31 = vadd.f32 1e-12, %v2130_v29 }
 0xb82   :  { %4838 = vrsqrt.f32 %v2133_v30 }
 0xb83   :  { %4840 = vrsqrt.f32 %v2132_v31 }
 0xb8c   :  { %v4839_v32 = vpop.eup %4838 }
 0xb8d   :  { %v4841_v34 = vpop.eup %4840  ;;  %v2137_v35 = vmul.f32 %v4839_v32, %v2121_v10 }
 0xb8e   :  { %v2136_v36 = vmul.f32 %v4841_v34, %v2120_v11 }
 0xb8f   :  { %v2145_v38 = vmul.f32 %v4196_v33, %v2137_v35 }
 0xb90   :  { %v2144_v39 = vmul.f32 %v4196_v33, %v2136_v36 }
 0xb91   :  { %v5521_v41 = vadd.f32 %v4197_v37, %v2145_v38 }
 0xb92   :  { %v5519_v40 = vadd.f32 %v4197_v37, %v2144_v39 }
 0xb94   :  { %4518 = vmatprep.mubr.msk.f32.mxu0 %vm299_vm1, %v5519_v40 }
 0xb95   :  { %4519 = vmatmul.mubr.msk.f32.vlgmr.msra.gmra.mrb[22].mxu0 %vm299_vm1, %v5521_v41 }
 0xb96   :  { %4523 = vmatprep.mubr.msk.f32.mxu0 %vm5088_vm3, %v5087_v16 }
 0xc68   :  { %v4520_v43 = vpop.f32.mrb[22].mxu0 }
 0xc69   :  { %v2243_v44 = vadd.f32 %v4520_v43, %v4198_v42  ;;  %v2237_v45 = vpop.f32.mrb[23].mxu0 }
 0xc6a   :  { %v2238_v46 = vadd.f32 %v4198_v42, %v2237_v45 }
 0xc6b   :  { %2247 = vst.msk [vmem:[#allocation2 + $0x8] sm:$0xff] %vm381_vm2, %v2243_v44 }
 0xc6c   :  { %2246 = vst.msk [vmem:[#allocation2] sm:$0xff] %vm381_vm2, %v2238_v46 }
 0xc72   :  { %v5546_v48 = vld [vmem:[#allocation2 + $0x8] sm:$0xff] }
 0xc73   :  { %v5532_v47 = vld [vmem:[#allocation2] sm:$0xff] }
 0xc74   :  { %2419 = vrot.lane.b32.xlu0 %v5532_v47, %s5092_s21  ;;  %2250 = vrot.lane.b32.xlu1 %v5532_v47, %s5090_s13 }
 0xc78   :  { %2590 = vrot.lane.b32.xlu0 %v5532_v47, %s5094_s27  ;;  %2417 = vrot.lane.b32.xlu1 %v5532_v47, %s5089_s5 }
 0xc7c   :  { %2763 = vrot.lane.b32.xlu0 %v5532_v47, %s5095_s10  ;;  %2592 = vrot.lane.b32.xlu1 %v5532_v47, %s5091_s17 }
 0xc80   :  { %3105 = vrot.lane.b32.xlu0 %v5546_v48, %s5092_s21  ;;  %2765 = vrot.lane.b32.xlu1 %v5532_v47, %s5093_s30 }
 0xc84   :  { %3278 = vrot.lane.b32.xlu0 %v5546_v48, %s5091_s17  ;;  %2936 = vrot.lane.b32.xlu1 %v5546_v48, %s5090_s13 }
 0xc88   :  { %3451 = vrot.lane.b32.xlu0 %v5546_v48, %s5093_s30  ;;  %3103 = vrot.lane.b32.xlu1 %v5546_v48, %s5089_s5 }
 0xc8c   :  { %2338 = vrot.lane.b32.xlu0 %v5532_v47, %s5097_s15  ;;  %3276 = vrot.lane.b32.xlu1 %v5546_v48, %s5094_s27 }
 0xc90   :  { %3449 = vrot.lane.b32.xlu1 %v5546_v48, %s5095_s10 }
 0xc94   :  { %2507 = vrot.lane.b32.xlu1 %v5532_v47, %s5096_s11 }
 0xce6   :  { %v2420_v49 = vpop.permute.xlu0 %2419  ;;  %v2251_v50 = vpop.permute.xlu1 %2250 }
 0xce7   :  { %4522 = vmatpush3.xpose.msk.msra.mxu0 %vm388_vm4, %v2251_v50  ;;  %4532 = vmatpush3.xpose.msk.msra.mxu1 %vm388_vm4, %v2420_v49 }
 0xce8   :  { %4541 = vmatprep.subr.mxu1 %v5087_v16  ;;  %4526 = vmatprep.subr.mxu0 %v5087_v16 }
 0xcea   :  { %v2591_v51 = vpop.permute.xlu0 %2590  ;;  %4524 = vmatmul.mubr.msk.f32.vlgmr.msra.gmra.mrb[24].mxu0 %vm388_vm4, %v5532_v47  ;;  %v2418_v52 = vpop.permute.xlu1 %2417 }
 0xceb   :  { %4534 = vmatmul.mubr.msk.f32.vlgmr.msra.gmra.mrb[20].mxu1 %vm388_vm4, %v2418_v52  ;;  %4528 = vmatprep.mubr.msk.f32.mxu0 %vm5088_vm3, %v5087_v16 }
 0xcec   :  { %4543 = vmatprep.mubr.msk.f32.mxu1 %vm5088_vm3, %v5087_v16 }
 0xcee   :  { %v2764_v53 = vpop.permute.xlu0 %2763  ;;  %v2593_v54 = vpop.permute.xlu1 %2592 }
 0xcef   :  { %4542 = vmatpush3.xpose.msk.msra.mxu1 %vm388_vm4, %v2593_v54 }
 0xcf0   :  { %4551 = vmatprep.subr.mxu1 %v5087_v16 }
 0xcf2   :  { %v3106_v55 = vpop.permute.xlu0 %3105  ;;  %4544 = vmatmul.mubr.msk.f32.vlgmr.msra.gmra.mrb[22].mxu1 %vm388_vm4, %v2591_v51  ;;  %v2766_v56 = vpop.permute.xlu1 %2765 }
 0xcf3   :  { %4552 = vmatpush3.xpose.msk.msra.mxu1 %vm388_vm4, %v2766_v56  ;;  %4553 = vmatprep.mubr.msk.f32.mxu1 %vm5088_vm3, %v5087_v16 }
 0xcf4   :  { %4561 = vmatprep.subr.mxu1 %v5087_v16 }
 0xcf6   :  { %v3279_v57 = vpop.permute.xlu0 %3278  ;;  %4554 = vmatmul.mubr.msk.f32.vlgmr.msra.gmra.mrb[24].mxu1 %vm388_vm4, %v2764_v53  ;;  %v2937_v58 = vpop.permute.xlu1 %2936 }
 0xcf7   :  { %4562 = vmatpush3.xpose.msk.msra.mxu1 %vm388_vm4, %v2937_v58  ;;  %4563 = vmatprep.mubr.msk.f32.mxu1 %vm5088_vm3, %v5087_v16 }
 0xcf8   :  { %4571 = vmatprep.subr.mxu1 %v5087_v16 }
 0xcfa   :  { %v3452_v59 = vpop.permute.xlu0 %3451  ;;  %4564 = vmatmul.mubr.msk.f32.vlgmr.msra.gmra.mrb[26].mxu1 %vm388_vm4, %v5546_v48  ;;  %v3104_v60 = vpop.permute.xlu1 %3103 }
 0xcfb   :  { %4572 = vmatpush3.xpose.msk.msra.mxu1 %vm388_vm4, %v3106_v55  ;;  %4573 = vmatprep.mubr.msk.f32.mxu1 %vm5088_vm3, %v5087_v16 }
 0xcfc   :  { %4581 = vmatprep.subr.mxu1 %v5087_v16 }
 0xcfe   :  { %v2339_v23 = vpop.permute.xlu0 %2338  ;;  %4574 = vmatmul.mubr.msk.f32.vlgmr.msra.gmra.mrb[28].mxu1 %vm388_vm4, %v3104_v60  ;;  %v3277_v61 = vpop.permute.xlu1 %3276 }
 0xcff   :  { %4527 = vmatpush3.msra.mxu0 %v2339_v23  ;;  %4582 = vmatpush3.xpose.msk.msra.mxu1 %vm388_vm4, %v3279_v57 }
 0xd00   :  { %4583 = vmatprep.mubr.msk.f32.mxu1 %vm5088_vm3, %v5087_v16  ;;  %4591 = vmatprep.subr.mxu1 %v5087_v16 }
 0xd01   :  { %4536 = vmatprep.subr.mxu0 %v5087_v16 }
 0xd02   :  { %4584 = vmatmul.mubr.msk.f32.vlgmr.msra.gmra.mrb[30].mxu1 %vm388_vm4, %v3277_v61  ;;  %v3450_v62 = vpop.permute.xlu1 %3449 }
 0xd03   :  { %4592 = vmatpush3.xpose.msk.msra.mxu1 %vm388_vm4, %v3452_v59  ;;  %4593 = vmatprep.mubr.msk.f32.mxu1 %vm5088_vm3, %v5087_v16 }
 0xd06   :  { %4594 = vmatmul.mubr.msk.f32.vlgmr.msra.gmra.mrb[32].mxu1 %vm388_vm4, %v3450_v62  ;;  %v5620_v33 = vpop.permute.xlu1 %2507 }
 0xdbd   :  { %v2322_v63 = vpop.f32.mrb[24].mxu0 }
 0xdbe   :  { %v2326_v0 = vmul.f32 0.35355338, %v2322_v63  ;;  %v4525_v1 = vpop.f32.mrb[25].mxu0  ;;  %v2491_v15 = vpop.f32.mrb[20].mxu1 }
 0xdbf   :  { %v2495_v14 = vmul.f32 0.35355338, %v2491_v15  ;;  %v4535_v2 = vpop.f32.mrb[21].mxu1 }
 0xdc0   :  { %v2327_v3 = vsel %vm388_vm4, %v2326_v0, -inf }
 0xdc1   :  { %2328 = vmax.xlane.f32.xlu0 %v2327_v3  ;;  %v2496_v4 = vsel %vm388_vm4, %v2495_v14, -inf }
 0xdc2   :  { %2497 = vmax.xlane.f32.xlu1 %v2496_v4 }
 0xdc5   :  { %v2664_v5 = vpop.f32.mrb[22].mxu1 }
 0xdc6   :  { %v2668_v6 = vmul.f32 0.35355338, %v2664_v5  ;;  %v4545_v7 = vpop.f32.mrb[23].mxu1 }
 0xdc8   :  { %v2669_v8 = vsel %vm388_vm4, %v2668_v6, -inf }
 0xdc9   :  { %2670 = vmax.xlane.f32.xlu0 %v2669_v8  ;;  %v2837_v9 = vpop.f32.mrb[24].mxu1 }
 0xdca   :  { %v2841_v10 = vmul.f32 0.35355338, %v2837_v9  ;;  %v4555_v11 = vpop.f32.mrb[25].mxu1 }
 0xdcc   :  { %v2842_v12 = vsel %vm388_vm4, %v2841_v10, -inf }
 0xdcd   :  { %2843 = vmax.xlane.f32.xlu0 %v2842_v12  ;;  %v3008_v13 = vpop.f32.mrb[26].mxu1 }
 0xdce   :  { %v3012_v17 = vmul.f32 0.35355338, %v3008_v13  ;;  %v4565_v18 = vpop.f32.mrb[27].mxu1 }
 0xdd0   :  { %v3013_v19 = vsel %vm388_vm4, %v3012_v17, -inf }
 0xdd1   :  { %3014 = vmax.xlane.f32.xlu1 %v3013_v19  ;;  %v3177_v20 = vpop.f32.mrb[28].mxu1 }
 0xdd2   :  { %v3181_v21 = vmul.f32 0.35355338, %v3177_v20  ;;  %v4575_v24 = vpop.f32.mrb[29].mxu1 }
 0xdd4   :  { %v3182_v25 = vsel %vm388_vm4, %v3181_v21, -inf }
 0xdd5   :  { %3183 = vmax.xlane.f32.xlu0 %v3182_v25  ;;  %v3350_v22 = vpop.f32.mrb[30].mxu1 }
 0xdd6   :  { %v3354_v26 = vmul.f32 0.35355338, %v3350_v22  ;;  %v4585_v27 = vpop.f32.mrb[31].mxu1 }
 0xdd8   :  { %v3355_v28 = vsel %vm388_vm4, %v3354_v26, -inf }
 0xdd9   :  { %3356 = vmax.xlane.f32.xlu1 %v3355_v28  ;;  %v3523_v29 = vpop.f32.mrb[32].mxu1 }
 0xdda   :  { %v3527_v30 = vmul.f32 0.35355338, %v3523_v29  ;;  %v4595_v31 = vpop.f32.mrb[33].mxu1 }
 0xddc   :  { %v3528_v32 = vsel %vm388_vm4, %v3527_v30, -inf }
 0xddd   :  { %3529 = vmax.xlane.f32.xlu0 %v3528_v32 }
 0xdea   :  { %2853 = vrot.lane.b32.xlu1 %v5532_v47, %s5098_s16 }
 0xdf3   :  { %2680 = vrot.lane.b32.xlu0 %v5532_v47, %s5099_s0 }
 0xe4e   :  { %v2329_v34 = vpop.xlane.xlu0 %2328 }
 0xe4f   :  { %v2330_v35 = vsub.f32 %v2326_v0, %v2329_v34  ;;  %v2498_v36 = vpop.xlane.xlu1 %2497 }
 0xe50   :  { %v2499_v37 = vsub.f32 %v2495_v14, %v2498_v36 }
 0xe51   :  { %v2331_v38 = vmul.f32 1.442695, %v2330_v35 }
 0xe52   :  { %v2500_v39 = vmul.f32 1.442695, %v2499_v37 }
 0xe53   :  { %4842 = vpow2.f32 %v2331_v38 }
 0xe54   :  { %4844 = vpow2.f32 %v2500_v39 }
 0xe56   :  { %v2671_v42 = vpop.xlane.xlu0 %2670 }
 0xe57   :  { %v2672_v43 = vsub.f32 %v2668_v6, %v2671_v42 }
 0xe59   :  { %v2673_v44 = vmul.f32 1.442695, %v2672_v43 }
 0xe5a   :  { %v2844_v45 = vpop.xlane.xlu0 %2843 }
 0xe5b   :  { %4846 = vpow2.f32 %v2673_v44  ;;  %v2845_v46 = vsub.f32 %v2841_v10, %v2844_v45 }
 0xe5d   :  { %v4843_v49 = vpop.eup %4842  ;;  %v2846_v50 = vmul.f32 1.442695, %v2845_v46 }
 0xe5e   :  { %v4845_v51 = vpop.eup %4844  ;;  %v2333_v47 = vsel %vm388_vm4, %v4843_v49, 0.0  ;;  %v3015_v57 = vpop.xlane.xlu1 %3014 }
 0xe5f   :  { %4848 = vpow2.f32 %v2846_v50  ;;  %2334 = vadd.xlane.f32.xlu1 %v2333_v47  ;;  %v2502_v52 = vsel %vm388_vm4, %v4845_v51, 0.0  ;;  %v3016_v58 = vsub.f32 %v3012_v17, %v3015_v57  ;;  %v3624_v57 = vld [vmem:[%s5770_s24 + $0x10] sm:$0xff] }
 0xe60   :  { %2503 = vadd.xlane.f32.xlu0 %v2502_v52 }
 0xe61   :  { %v3017_v61 = vmul.f32 1.442695, %v3016_v58  ;;  %v3625_v58 = vld [vmem:[%s5770_s24 + $0x18] sm:$0xff] }
 0xe62   :  { %v3184_v59 = vpop.xlane.xlu0 %3183 }
 0xe63   :  { %v3185_v23 = vsub.f32 %v3181_v21, %v3184_v59  ;;  %4850 = vpow2.f32 %v3017_v61 }
 0xe65   :  { %v4847_v53 = vpop.eup %4846  ;;  %v3186_v0 = vmul.f32 1.442695, %v3185_v23 }
 0xe66   :  { %v2675_v54 = vsel %vm388_vm4, %v4847_v53, 0.0  ;;  %v3357_v60 = vpop.xlane.xlu1 %3356 }
 0xe67   :  { %2676 = vadd.xlane.f32.xlu1 %v2675_v54  ;;  %v3358_v62 = vsub.f32 %v3354_v26, %v3357_v60  ;;  %4852 = vpow2.f32 %v3186_v0  ;;  %v3623_v54 = vld [vmem:[%s5770_s24 + $0x8] sm:$0xff]  ;;  %v4709_v60 = vpack.c.bf16 %v3625_v58, %v3624_v57  ;;  %v3874_v58 = vld [vmem:[%s5775_s8 + $0x20] sm:$0xff] }
 0xe69   :  { %v5625_v55 = vpop.eup %4848  ;;  %v3359_v1 = vmul.f32 1.442695, %v3358_v62 }
 0xe6a   :  { %v2848_v56 = vsel %vm388_vm4, %v5625_v55, 0.0  ;;  %v3530_v63 = vpop.xlane.xlu0 %3529  ;;  %v2854_v10 = vpop.permute.xlu1 %2853 }
 0xe6b   :  { %2849 = vadd.xlane.f32.xlu0 %v2848_v56  ;;  %v3531_v15 = vsub.f32 %v3527_v30, %v3530_v63  ;;  %4854 = vpow2.f32 %v3359_v1 }
 0xe6d   :  { %v3532_v14 = vmul.f32 1.442695, %v3531_v15  ;;  %v4851_v2 = vpop.eup %4850 }
 0xe6e   :  { %v3019_v4 = vsel %vm388_vm4, %v4851_v2, 0.0  ;;  %v2681_v11 = vpop.permute.xlu0 %2680 }
 0xe6f   :  { %4856 = vpow2.f32 %v3532_v14 }
 0xe71   :  { %v5633_v3 = vpop.eup %4852 }
 0xe72   :  { %v3188_v6 = vsel %vm388_vm4, %v5633_v3, 0.0 }
 0xe75   :  { %v5636_v5 = vpop.eup %4854 }
 0xe76   :  { %v3361_v7 = vsel %vm388_vm4, %v5636_v5, 0.0 }
 0xe78   :  { %3193 = vrot.lane.b32.xlu1 %v5546_v48, %s5096_s11 }
 0xe79   :  { %v5642_v8 = vpop.eup %4856 }
 0xe7a   :  { %v3534_v9 = vsel %vm388_vm4, %v5642_v8, 0.0 }
 0xe81   :  { %3024 = vrot.lane.b32.xlu0 %v5546_v48, %s5097_s15 }
 0xe9c   :  { %3020 = vadd.xlane.f32.xlu1 %v3019_v4 }
 0xea0   :  { %3189 = vadd.xlane.f32.xlu0 %v3188_v6  ;;  %3362 = vadd.xlane.f32.xlu1 %v3361_v7 }
 0xea4   :  { %3535 = vadd.xlane.f32.xlu1 %v3534_v9 }
 0xeb5   :  { %3539 = vrot.lane.b32.xlu1 %v5546_v48, %s5098_s16 }
 0xeb6   :  { %3366 = vrot.lane.b32.xlu0 %v5546_v48, %s5099_s0 }
 0xeec   :  { %v2335_v12 = vpop.xlane.xlu1 %2334 }
 0xeed   :  { %4858 = vrcp.f32 %v2335_v12  ;;  %v2504_v13 = vpop.xlane.xlu0 %2503 }
 0xeee   :  { %4860 = vrcp.f32 %v2504_v13 }
 0xef4   :  { %v2677_v17 = vpop.xlane.xlu1 %2676 }
 0xef5   :  { %4862 = vrcp.f32 %v2677_v17 }
 0xef7   :  { %v4859_v18 = vpop.eup %4858 }
 0xef8   :  { %v2337_v19 = vmul.f32 %v4859_v18, %v4843_v49  ;;  %v2850_v20 = vpop.xlane.xlu0 %2849  ;;  %v4861_v21 = vpop.eup %4860 }
 0xef9   :  { %4864 = vrcp.f32 %v2850_v20  ;;  %v2506_v48 = vmul.f32 %v4861_v21, %v4845_v51  ;;  %v3194_v28 = vpop.permute.xlu1 %3193 }
 0xefa   :  { %4529 = vmatmul.mubr.msk.f32.vlgmr.msra.gmra.mrb[26].mxu0 %vm388_vm4, %v2337_v19 }
 0xefb   :  { %4537 = vmatpush3.msra.mxu0 %v5620_v33  ;;  %4538 = vmatprep.mubr.msk.f32.mxu0 %vm5088_vm3, %v5087_v16 }
 0xefc   :  { %4546 = vmatprep.subr.mxu0 %v5087_v16  ;;  %v3025_v27 = vpop.permute.xlu0 %3024 }
 0xefe   :  { %4539 = vmatmul.mubr.msk.f32.vlgmr.msra.gmra.mrb[28].mxu0 %vm388_vm4, %v2506_v48 }
 0xeff   :  { %v4863_v24 = vpop.eup %4862  ;;  %4547 = vmatpush3.msra.mxu0 %v2681_v11  ;;  %4548 = vmatprep.mubr.msk.f32.mxu0 %vm5088_vm3, %v5087_v16 }
 0xf00   :  { %v2679_v25 = vmul.f32 %v4863_v24, %v4847_v53  ;;  %4556 = vmatprep.subr.mxu0 %v5087_v16  ;;  %v3622_v53 = vld [vmem:[%s5770_s24] sm:$0xff] }
 0xf02   :  { %4549 = vmatmul.mubr.msk.f32.vlgmr.msra.gmra.mrb[30].mxu0 %vm388_vm4, %v2679_v25 }
 0xf03   :  { %v4865_v22 = vpop.eup %4864  ;;  %4557 = vmatpush3.msra.mxu0 %v2854_v10  ;;  %4558 = vmatprep.mubr.msk.f32.mxu0 %vm5088_vm3, %v5087_v16 }
 0xf04   :  { %v2852_v26 = vmul.f32 %v4865_v22, %v5625_v55  ;;  %4566 = vmatprep.subr.mxu0 %v5087_v16  ;;  %v4705_v55 = vpack.c.bf16 %v3623_v54, %v3622_v53  ;;  %v3871_v53 = vld [vmem:[%s5775_s8 + $0x8] sm:$0xff] }
 0xf06   :  { %4559 = vmatmul.mubr.msk.f32.vlgmr.msra.gmra.mrb[32].mxu0 %vm388_vm4, %v2852_v26  ;;  %4706 = vmatprep.subr.bf16.mxu1 %v4705_v55 }
 0xf07   :  { %4567 = vmatpush3.msra.mxu0 %v3025_v27  ;;  %4568 = vmatprep.mubr.msk.f32.mxu0 %vm5088_vm3, %v5087_v16 }
 0xf08   :  { %4576 = vmatprep.subr.mxu0 %v5087_v16  ;;  %4708 = vmatpush3.bf16.msra.mxu1 %v4705_v55  ;;  %v3872_v55 = vld [vmem:[%s5775_s8 + $0x10] sm:$0xff] }
 0xf09   :  { %4710 = vmatprep.subr.bf16.mxu1 %v4709_v60 }
 0xf0c   :  { %4712 = vmatpush3.bf16.msra.mxu1 %v4709_v60 }
 0xf29   :  { %v3021_v29 = vpop.xlane.xlu1 %3020 }
 0xf2a   :  { %4866 = vrcp.f32 %v3021_v29  ;;  %v3761_v29 = vld [vmem:[%s5772_s9 + $0x8] sm:$0xff] }
 0xf2d   :  { %v3190_v30 = vpop.xlane.xlu0 %3189  ;;  %v3363_v31 = vpop.xlane.xlu1 %3362 }
 0xf2e   :  { %4868 = vrcp.f32 %v3190_v30 }
 0xf2f   :  { %4870 = vrcp.f32 %v3363_v31  ;;  %v3762_v31 = vld [vmem:[%s5772_s9 + $0x10] sm:$0xff] }
 0xf31   :  { %v3536_v32 = vpop.xlane.xlu1 %3535  ;;  %v3367_v38 = vpop.permute.xlu0 %3366 }
 0xf32   :  { %4872 = vrcp.f32 %v3536_v32  ;;  %v3763_v32 = vld [vmem:[%s5772_s9 + $0x18] sm:$0xff] }
 0xf34   :  { %v4867_v33 = vpop.eup %4866 }
 0xf35   :  { %v3023_v34 = vmul.f32 %v4867_v33, %v4851_v2  ;;  %v3540_v43 = vpop.permute.xlu1 %3539  ;;  %v4717_v33 = vpack.c.bf16 %v3763_v32, %v3762_v31 }
 0xf37   :  { %4569 = vmatmul.mubr.msk.f32.vlgmr.msra.gmra.mrb[34].mxu0 %vm388_vm4, %v3023_v34 }
 0xf38   :  { %v4869_v35 = vpop.eup %4868  ;;  %4577 = vmatpush3.msra.mxu0 %v3194_v28  ;;  %4578 = vmatprep.mubr.msk.f32.mxu0 %vm5088_vm3, %v5087_v16  ;;  %v3760_v28 = vld [vmem:[%s5772_s9] sm:$0xff] }
 0xf39   :  { %v3192_v36 = vmul.f32 %v4869_v35, %v5633_v3  ;;  %4586 = vmatprep.subr.mxu0 %v5087_v16  ;;  %v4871_v37 = vpop.eup %4870  ;;  %v4713_v30 = vpack.c.bf16 %v3761_v29, %v3760_v28 }
 0xf3a   :  { %v3365_v39 = vmul.f32 %v4871_v37, %v5636_v5 }
 0xf3b   :  { %4579 = vmatmul.mubr.msk.f32.vlgmr.msra.gmra.mrb[36].mxu0 %vm388_vm4, %v3192_v36 }
 0xf3c   :  { %4587 = vmatpush3.msra.mxu0 %v3367_v38  ;;  %4588 = vmatprep.mubr.msk.f32.mxu0 %vm5088_vm3, %v5087_v16  ;;  %v4873_v42 = vpop.eup %4872 }
 0xf3d   :  { %4596 = vmatprep.subr.mxu0 %v5087_v16  ;;  %v3538_v44 = vmul.f32 %v4873_v42, %v5642_v8  ;;  %v4225_v8 = vld [vmem:[%s5771_s20] ss:$0 sm:$0xff] }
 0xf3f   :  { %4589 = vmatmul.mubr.msk.f32.vlgmr.msra.gmra.mrb[38].mxu0 %vm388_vm4, %v3365_v39 }
 0xf40   :  { %4597 = vmatpush3.msra.mxu0 %v3540_v43  ;;  %4598 = vmatprep.mubr.msk.f32.mxu0 %vm5088_vm3, %v5087_v16  ;;  %v4228_v43 = vld [vmem:[%s5773_s23] ss:$0 sm:$0xff] }
 0xf41   :  { %4714 = vmatprep.subr.bf16.mxu0 %v4713_v30 }
 0xf43   :  { %4599 = vmatmul.mubr.msk.f32.vlgmr.msra.gmra.mrb[40].mxu0 %vm388_vm4, %v3538_v44 }
 0xf44   :  { %4716 = vmatpush3.bf16.msra.mxu0 %v4713_v30 }
 0xf45   :  { %4718 = vmatprep.subr.bf16.mxu0 %v4717_v33 }
 0xf48   :  { %4720 = vmatpush3.bf16.msra.mxu0 %v4717_v33 }
 0xfcd   :  { %v2410_v45 = vpop.f32.mrb[26].mxu0 }
 0xfce   :  { %2414 = vst.msk [vmem:[#allocation3] sm:$0xff] %vm388_vm4, %v2410_v45  ;;  %v4530_v46 = vpop.f32.mrb[27].mxu0  ;;  %v4229_v45 = vld [vmem:[%s5774_s26] ss:$0 sm:$0xff] }
 0xfd1   :  { %v2579_v49 = vpop.f32.mrb[28].mxu0 }
 0xfd2   :  { %2584 = vrot.lane.b32.xlu0 %v2579_v49, %s5083_s19  ;;  %v4540_v50 = vpop.f32.mrb[29].mxu0 }
 0xfd5   :  { %v2752_v51 = vpop.f32.mrb[30].mxu0 }
 0xfd6   :  { %2757 = vrot.lane.b32.xlu1 %v2752_v51, %s5100_s18  ;;  %v4550_v47 = vpop.f32.mrb[31].mxu0 }
 0xfd9   :  { %v2925_v16 = vpop.f32.mrb[32].mxu0 }
 0xfda   :  { %2930 = vrot.lane.b32.xlu1 %v2925_v16, %s5101_s22  ;;  %v4560_v52 = vpop.f32.mrb[33].mxu0 }
 0xfdb   :  { %v3870_v52 = vld [vmem:[%s5775_s8] sm:$0xff] }
 0xfdc   :  { %v4721_v54 = vpack.c.bf16 %v3871_v53, %v3870_v52 }
 0xfde   :  { %4722 = vmatprep.subr.bf16.mxu1 %v4721_v54 }
0x100a   :  { %v3096_v56 = vpop.f32.mrb[34].mxu0 }
0x100b   :  { %3100 = vst.msk [vmem:[#allocation3 + $0x8] sm:$0xff] %vm388_vm4, %v3096_v56  ;;  %v4570_v59 = vpop.f32.mrb[35].mxu0  ;;  %v3873_v56 = vld [vmem:[%s5775_s8 + $0x18] sm:$0xff] }
0x100c   :  { %v4725_v57 = vpack.c.bf16 %v3873_v56, %v3872_v55  ;;  %v3875_v59 = vld [vmem:[%s5775_s8 + $0x28] sm:$0xff]  ;;  %v4236_v55 = vld [vmem:[%s5778_s1] ss:$0 sm:$0xff] }
0x100d   :  { %v4729_v60 = vpack.c.bf16 %v3875_v59, %v3874_v58  ;;  %v4237_v59 = vld [vmem:[%s5241_s12] ss:$0 sm:$0xff] }
0x100e   :  { %v3265_v23 = vpop.f32.mrb[36].mxu0 }
0x100f   :  { %3270 = vrot.lane.b32.xlu0 %v3265_v23, %s5083_s19  ;;  %v4580_v61 = vpop.f32.mrb[37].mxu0  ;;  %v3876_v23 = vld [vmem:[%s5775_s8 + $0x30] sm:$0xff] }
0x1010   :  { %v3877_v61 = vld [vmem:[%s5775_s8 + $0x38] sm:$0xff] }
0x1012   :  { %v3438_v62 = vpop.f32.mrb[38].mxu0 }
0x1013   :  { %3443 = vrot.lane.b32.xlu0 %v3438_v62, %s5100_s18  ;;  %v4590_v63 = vpop.f32.mrb[39].mxu0  ;;  %v4733_v62 = vpack.c.bf16 %v3877_v61, %v3876_v23 }
0x1014   :  { %v4230_v63 = vld [vmem:[%s5776_s28] ss:$0 sm:$0xff] }
0x1016   :  { %v3611_v0 = vpop.f32.mrb[40].mxu0 }
0x1017   :  { %3616 = vrot.lane.b32.xlu1 %v3611_v0, %s5101_s22  ;;  %v4600_v1 = vpop.f32.mrb[41].mxu0 }
0x1044   :  { %v2585_v15 = vpop.permute.xlu0 %2584 }
0x1045   :  { %2587 = vst.msk [vmem:[#allocation3] sm:$0xff] %vm724_vm5, %v2585_v15 }
0x1048   :  { %v2758_v14 = vpop.permute.xlu1 %2757 }
0x1049   :  { %2760 = vst.msk [vmem:[#allocation3] sm:$0xff] %vm898_vm6, %v2758_v14 }
0x104c   :  { %v2931_v2 = vpop.permute.xlu1 %2930 }
0x104d   :  { %2933 = vst.msk [vmem:[#allocation3] sm:$0xff] %vm1072_vm7, %v2931_v2 }
0x1054   :  { %v3620_v3 = vld [vmem:[#allocation3] sm:$0xff] }
0x1055   :  { %4609 = vmatprep.mubr.msk.f32.mxu1 %vm299_vm1, %v3620_v3 }
0x1081   :  { %v3271_v4 = vpop.permute.xlu0 %3270 }
0x1082   :  { %3273 = vst.msk [vmem:[#allocation3 + $0x8] sm:$0xff] %vm724_vm5, %v3271_v4 }
0x1085   :  { %v3444_v5 = vpop.permute.xlu0 %3443 }
0x1086   :  { %3446 = vst.msk [vmem:[#allocation3 + $0x8] sm:$0xff] %vm898_vm6, %v3444_v5 }
0x1089   :  { %v3617_v6 = vpop.permute.xlu1 %3616 }
0x108a   :  { %3619 = vst.msk [vmem:[#allocation3 + $0x8] sm:$0xff] %vm1072_vm7, %v3617_v6 }
0x1091   :  { %v3621_v7 = vld [vmem:[#allocation3 + $0x8] sm:$0xff] }
0x1092   :  { %4610 = vmatmul.mubr.msk.f32.vlgmr.msra.gmra.mrb[34].mxu1 %vm299_vm1, %v3621_v7 }
0x1093   :  { %4724 = vmatpush3.bf16.msra.mxu1 %v4721_v54 }
0x1094   :  { %4726 = vmatprep.subr.bf16.mxu1 %v4725_v57 }
0x1097   :  { %4728 = vmatpush3.bf16.msra.mxu1 %v4725_v57 }
0x1098   :  { %4730 = vmatprep.subr.bf16.mxu1 %v4729_v60 }
0x109b   :  { %4732 = vmatpush3.bf16.msra.mxu1 %v4729_v60 }
0x109c   :  { %4734 = vmatprep.subr.bf16.mxu1 %v4733_v62 }
0x109f   :  { %4736 = vmatpush3.bf16.msra.mxu1 %v4733_v62 }
0x1165   :  { %v4611_v9 = vpop.f32.mrb[34].mxu1 }
0x1166   :  { %v3711_v10 = vadd.f32 %v4611_v9, %v4225_v8  ;;  %v3705_v11 = vpop.f32.mrb[35].mxu1 }
0x1167   :  { %v3706_v12 = vadd.f32 %v4225_v8, %v3705_v11 }
0x1168   :  { %v3715_v13 = vadd.f32 %v3711_v10, %v5521_v41 }
0x1169   :  { %v3714_v17 = vadd.f32 %v3706_v12, %v5519_v40 }
0x116a   :  { %v3721_v18 = vsel %vm299_vm1, %v3715_v13, 0.0 }
0x116b   :  { %3722 = vadd.xlane.f32.xlu1 %v3721_v18  ;;  %v3718_v19 = vsel %vm299_vm1, %v3714_v17, 0.0 }
0x116c   :  { %3719 = vadd.xlane.f32.xlu0 %v3718_v19 }
0x11f8   :  { %v3723_v20 = vpop.xlane.xlu1 %3722 }
0x11f9   :  { %v3725_v21 = vmul.f32 0.03125, %v3723_v20  ;;  %v3720_v48 = vpop.xlane.xlu0 %3719 }
0x11fa   :  { %v3724_v24 = vmul.f32 0.03125, %v3720_v48 }
0x11fb   :  { %v3727_v25 = vsub.f32 %v3715_v13, %v3725_v21 }
0x11fc   :  { %v3726_v22 = vsub.f32 %v3714_v17, %v3724_v24  ;;  %v4233_v24 = vld [vmem:[%s5777_s29] ss:$0 sm:$0xff] }
0x11fd   :  { %v3729_v40 = vmul.f32 %v3727_v25, %v3727_v25 }
0x11fe   :  { %v3728_v26 = vmul.f32 %v3726_v22, %v3726_v22 }
0x11ff   :  { %v3733_v27 = vsel %vm299_vm1, %v3729_v40, 0.0 }
0x1200   :  { %v3730_v41 = vsel %vm299_vm1, %v3728_v26, 0.0 }
0x1201   :  { %3731 = vadd.xlane.f32.xlu0 %v3730_v41 }
0x1205   :  { %3734 = vadd.xlane.f32.xlu0 %v3733_v27 }
0x128e   :  { %v3732_v34 = vpop.xlane.xlu0 %3731 }
0x128f   :  { %v3736_v35 = vmul.f32 0.03125, %v3732_v34 }
0x1291   :  { %v3738_v36 = vadd.f32 1e-12, %v3736_v35 }
0x1292   :  { %v3735_v37 = vpop.xlane.xlu0 %3734 }
0x1293   :  { %4874 = vrsqrt.f32 %v3738_v36  ;;  %v3737_v38 = vmul.f32 0.03125, %v3735_v37 }
0x1295   :  { %v3739_v39 = vadd.f32 1e-12, %v3737_v38 }
0x1297   :  { %4876 = vrsqrt.f32 %v3739_v39 }
0x129d   :  { %v4875_v42 = vpop.eup %4874 }
0x129e   :  { %v3742_v44 = vmul.f32 %v4875_v42, %v3726_v22  ;;  %v4012_v42 = vld [vmem:[%s5246_s6] sm:$0xff] }
0x12a0   :  { %v3750_v46 = vmul.f32 %v4228_v43, %v3742_v44 }
0x12a1   :  { %v4877_v49 = vpop.eup %4876 }
0x12a2   :  { %v3743_v50 = vmul.f32 %v4877_v49, %v3727_v25  ;;  %v3758_v51 = vadd.f32 %v4229_v45, %v3750_v46  ;;  %v4015_v46 = vld [vmem:[%s5246_s6 + $0x18] sm:$0xff] }
0x12a4   :  { %v3751_v47 = vmul.f32 %v4228_v43, %v3743_v50  ;;  %4620 = vmatprep.mubr.msk.f32.mxu0 %vm299_vm1, %v3758_v51  ;;  %v4013_v43 = vld [vmem:[%s5246_s6 + $0x8] sm:$0xff] }
0x12a5   :  { %v4737_v44 = vpack.c.bf16 %v4013_v43, %v4012_v42 }
0x12a6   :  { %v3759_v16 = vadd.f32 %v4229_v45, %v3751_v47  ;;  %v4014_v45 = vld [vmem:[%s5246_s6 + $0x10] sm:$0xff]  ;;  %s5102_s6 = smov [#allocation15]  }
0x12a7   :  { %4738 = vmatprep.subr.bf16.mxu0 %v4737_v44  ;;  %v4741_v49 = vpack.c.bf16 %v4015_v46, %v4014_v45  ;;  %s4111_s2 = sshll.u32 %s5102_s6, 4  ;;  %s4112_s2 = int_to_ptr.vmem [resolvable:$true] %s4111_s2 }
0x12a8   :  { %4621 = vmatmul.mubr.msk.f32.vlgmr.msra.gmra.mrb[42].mxu0 %vm299_vm1, %v3759_v16  ;;  %s5018_s12 = scalar_lea.vmem %s4112_s2, 256  ;;  %p5023_p7 = scmp.lt.s32.totalorder %s4112_s2, %s4112_s2 }
0x12a9   :  { %4740 = vmatpush3.bf16.msra.mxu0 %v4737_v44  ;;  %p5019_p6 = scmp.ne.s32.totalorder %s4112_s2, %s5018_s12  ;;  %p5024_p8 = scmp.lt.s32.totalorder %s5018_s12, %s5018_s12 }
0x12aa   :  { %4742 = vmatprep.subr.bf16.mxu0 %v4741_v49 }
0x12ab   :  { %p5025_p9 = por %p5024_p8, %p5023_p7 }
0x12ad   :  { %4744 = vmatpush3.bf16.msra.mxu0 %v4741_v49  ;;  %p5026_p10 = pnand %p5025_p9, %p5019_p6 }
0x137b   :  { %v4622_v0 = vpop.f32.mrb[42].mxu0 }
0x137c   :  { %v3849_v1 = vadd.f32 %v4622_v0, %v4230_v63  ;;  %v3843_v15 = vpop.f32.mrb[43].mxu0 }
0x137d   :  { %v3844_v14 = vadd.f32 %v4230_v63, %v3843_v15  ;;  %v4238_v63 = vld [vmem:[#allocation13] ss:$0 sm:$0xff] }
0x137e   :  { %v3855_v2 = vmul.f32 0.044715, %v3849_v1  ;;  %v3853_v20 = vmul.f32 0.5, %v3849_v1 }
0x137f   :  { %v3854_v3 = vmul.f32 0.044715, %v3844_v14  ;;  %v3852_v18 = vmul.f32 0.5, %v3844_v14 }
0x1380   :  { %v3857_v4 = vmul.f32 %v3855_v2, %v3849_v1 }
0x1381   :  { %v3856_v5 = vmul.f32 %v3854_v3, %v3844_v14 }
0x1382   :  { %v3859_v6 = vmul.f32 %v3857_v4, %v3849_v1 }
0x1383   :  { %v3858_v7 = vmul.f32 %v3856_v5, %v3844_v14 }
0x1384   :  { %v3861_v8 = vadd.f32 %v3859_v6, %v3849_v1 }
0x1385   :  { %v3860_v9 = vadd.f32 %v3858_v7, %v3844_v14 }
0x1386   :  { %v3863_v10 = vmul.f32 0.7978846, %v3861_v8 }
0x1387   :  { %v3862_v11 = vmul.f32 0.7978846, %v3860_v9 }
0x1388   :  { %4878 = vtanh.f32 %v3863_v10 }
0x1389   :  { %4880 = vtanh.f32 %v3862_v11 }
0x1392   :  { %v4879_v12 = vpop.eup %4878 }
0x1393   :  { %v4881_v13 = vpop.eup %4880  ;;  %v3867_v17 = vadd.f32 1.0, %v4879_v12 }
0x1394   :  { %v3866_v19 = vadd.f32 1.0, %v4881_v13 }
0x1395   :  { %v3869_v48 = vmul.f32 %v3867_v17, %v3853_v20 }
0x1396   :  { %v3868_v21 = vmul.f32 %v3866_v19, %v3852_v18 }
0x1398   :  { %4639 = vmatprep.mubr.msk.f32.mxu1 %vm2026_vm8, %v3868_v21 }
0x1399   :  { %4640 = vmatmul.mubr.msk.f32.vlgmr.msra.gmra.mrb[36].mxu1 %vm2026_vm8, %v3869_v48 }
0x146c   :  { %v4641_v25 = vpop.f32.mrb[36].mxu1 }
0x146d   :  { %v3963_v22 = vadd.f32 %v4641_v25, %v4233_v24  ;;  %v3957_v26 = vpop.f32.mrb[37].mxu1 }
0x146e   :  { %v3958_v41 = vadd.f32 %v4233_v24, %v3957_v26 }
0x146f   :  { %v3967_v40 = vadd.f32 %v3963_v22, %v3759_v16 }
0x1470   :  { %v3966_v27 = vadd.f32 %v3958_v41, %v3758_v51 }
0x1471   :  { %v3973_v28 = vsel %vm299_vm1, %v3967_v40, 0.0 }
0x1472   :  { %3974 = vadd.xlane.f32.xlu0 %v3973_v28  ;;  %v3970_v29 = vsel %vm299_vm1, %v3966_v27, 0.0 }
0x1473   :  { %3971 = vadd.xlane.f32.xlu1 %v3970_v29 }
0x14ff   :  { %v3975_v30 = vpop.xlane.xlu0 %3974 }
0x1500   :  { %v3977_v31 = vmul.f32 0.03125, %v3975_v30  ;;  %v3972_v32 = vpop.xlane.xlu1 %3971 }
0x1501   :  { %v3976_v33 = vmul.f32 0.03125, %v3972_v32 }
0x1502   :  { %v3979_v34 = vsub.f32 %v3967_v40, %v3977_v31 }
0x1503   :  { %v3978_v35 = vsub.f32 %v3966_v27, %v3976_v33 }
0x1504   :  { %v3981_v36 = vmul.f32 %v3979_v34, %v3979_v34 }
0x1505   :  { %v3980_v37 = vmul.f32 %v3978_v35, %v3978_v35 }
0x1506   :  { %v3985_v38 = vsel %vm299_vm1, %v3981_v36, 0.0 }
0x1507   :  { %3986 = vadd.xlane.f32.xlu0 %v3985_v38  ;;  %v3982_v39 = vsel %vm299_vm1, %v3980_v37, 0.0 }
0x1508   :  { %3983 = vadd.xlane.f32.xlu1 %v3982_v39 }
0x1594   :  { %v3987_v50 = vpop.xlane.xlu0 %3986 }
0x1595   :  { %v3989_v51 = vmul.f32 0.03125, %v3987_v50  ;;  %v3984_v47 = vpop.xlane.xlu1 %3983 }
0x1596   :  { %v3988_v16 = vmul.f32 0.03125, %v3984_v47 }
0x1597   :  { %v3991_v52 = vadd.f32 1e-12, %v3989_v51 }
0x1598   :  { %v3990_v53 = vadd.f32 1e-12, %v3988_v16 }
0x1599   :  { %4882 = vrsqrt.f32 %v3991_v52 }
0x159a   :  { %4884 = vrsqrt.f32 %v3990_v53 }
0x15a3   :  { %v4883_v54 = vpop.eup %4882 }
0x15a4   :  { %v4885_v56 = vpop.eup %4884  ;;  %v3995_v57 = vmul.f32 %v4883_v54, %v3979_v34 }
0x15a5   :  { %v3994_v58 = vmul.f32 %v4885_v56, %v3978_v35 }
0x15a6   :  { %v4003_v60 = vmul.f32 %v4236_v55, %v3995_v57 }
0x15a7   :  { %v4002_v23 = vmul.f32 %v4236_v55, %v3994_v58 }
0x15a8   :  { %v4011_v62 = vadd.f32 %v4237_v59, %v4003_v60 }
0x15a9   :  { %v4010_v61 = vadd.f32 %v4237_v59, %v4002_v23 }
0x15ab   :  { %4650 = vmatprep.mubr.msk.f32.mxu0 %vm299_vm1, %v4010_v61 }
0x15ac   :  { %4651 = vmatmul.mubr.msk.f32.vlgmr.msra.gmra.mrb[44].mxu0 %vm299_vm1, %v4011_v62 }
0x167f   :  { %v4652_v0 = vpop.f32.mrb[44].mxu0 }
0x1680   :  { %v4101_v1 = vadd.f32 %v4652_v0, %v4238_v63  ;;  %v4095_v15 = vpop.f32.mrb[45].mxu0 }
0x1681   :  { %v4096_v14 = vadd.f32 %v4238_v63, %v4095_v15 }
0x1682   :  { %4105 = vst.msk [vmem:[#allocation15 + $0x8] sm:$0xff] %vm206_vm0, %v4101_v1 }
0x1683   :  { %4104 = vst.msk [vmem:[#allocation15] sm:$0xff] %vm206_vm0, %v4096_v14 }
0x1684   :  { %5029 = shalt.err (!%p5026_p10)
}
0x1685   :  { %s5030_s5 = scalar_lea.hbm %s5256_s4, 256 }
0x1686   :  { %p5031_p11 = scmp.ne.s32.totalorder %s5256_s4, %s5030_s5  ;;  %p5034_p12 = scmp.lt.u32.totalorder %s5030_s5, %s5256_s4 }
0x1688   :  { %p5036_p13 = pnand %p5034_p12, %p5031_p11 }
0x168a   :  { %5039 = shalt.err (!%p5036_p13)
}
0x168b   :  { %4117 = dma.vmem_to_hbm [thread:$0]  %s4112_s2, 256, %s5256_s4, [#allocation6], %s5082_s7, %s5082_s7, %s5083_s19  }
0x168c   :  { %5048 = dma.done.wait [#allocation6], 256  }
0x168d   :  { %5049 = vsyncadd [#allocation6], 4294967040 }
0x168e   :  { %4121 = vsyncpa [#allocation5], 1 }
0x168f   :  { %4122 = vsyncpa [#allocation8], 1 }
0x1690   :  { %4123 = vsyncpa [#allocation11], 1 }
0x1691   :  { %4124 = vsyncpa [#allocation14], 1 }
0x1692   :  { %4125 = vsyncpa [#allocation6], 1 }

</bundles_post_ra>
